<compile_context>
chip_gen: v7x
topology: tpu7x:2x2x1
jax: 0.10.0
libtpu: 0.0.40
codegen_flags: <defaults>
</compile_context>

<pallas_src>
import functools

import jax
import jax.numpy as jnp
from jax.experimental import pallas as pl
from jax.experimental.pallas import tpu as pltpu


# ----------------------------------------------------------------------------
# In-kernel helpers
# ----------------------------------------------------------------------------
def _mxu(a, b):
    """a @ b on the MXU: bf16 operands, f32 accumulation (cast is a no-op for
    operands that are already bf16, e.g. the weight refs)."""
    return jnp.dot(a.astype(jnp.bfloat16), b.astype(jnp.bfloat16),
                   preferred_element_type=jnp.float32)


def _mxu_nt(a, b):
    """a @ b.T on the MXU (trans_b dot_general): bf16 operands, f32 accumulation."""
    return jax.lax.dot_general(
        a.astype(jnp.bfloat16), b.astype(jnp.bfloat16),
        dimension_numbers=(((1,), (1,)), ((), ())),
        preferred_element_type=jnp.float32)


def _layernorm(x, g, b, eps):
    mu = jnp.mean(x, axis=-1, keepdims=True)
    var = jnp.mean((x - mu) ** 2, axis=-1, keepdims=True)
    return (x - mu) * jax.lax.rsqrt(var + eps) * g + b


# ----------------------------------------------------------------------------
# Kernel: one grid step == (one batch-pack of Bt sequences) x (one encoder layer)
# grid = (B // Bt, n_layers); the residual stream lives in a VMEM scratch.
# At the last layer step, recon_node_1 / transpose / recon_node_2 run in-kernel
# and the (Bt, E, n_node) block (lane-dense in n_node) is stored.
# ----------------------------------------------------------------------------
def _reconstructor_layer_kernel(
    src_ref,
    wqkv_ref, bqkv_ref, wo_ref, bo_ref,
    ln1g_ref, ln1b_ref,
    w1_ref, b1_ref, w2_ref, b2_ref,
    ln2g_ref, ln2b_ref,
    r1w_ref, r1b_ref, r2wt_ref, r2b_ref,
    out_ref,
    x_scr,
    *, bt, nhead, eps):
    l = pl.program_id(1)

    S = src_ref.shape[1]
    D = src_ref.shape[2]
    M = bt * S
    Dh = D // nhead

    # ---- load the residual stream into VMEM scratch at the first layer step ----
    @pl.when(l == 0)
    def _():
        x_scr[...] = src_ref[...].reshape(M, D).astype(jnp.float32)

    x = x_scr[...]                                            # (M, D) f32

    # ---- fused QKV projection: one (M,D) @ (D,3D) matmul (scale pre-folded) ----
    qkv = _mxu(x, wqkv_ref[0]) + bqkv_ref[0]                  # (M, 3D) f32
    wo = wo_ref[0]                                            # (D, D) bf16

    # ---- multi-head attention (per batch / per head softmax), then ONE W_o matmul ----
    per_batch = []
    for b in range(bt):
        qkv_b = qkv[b * S:(b + 1) * S, :]                     # (S, 3D) static slice
        heads = []
        for h in range(nhead):
            qh = qkv_b[:, h * Dh:(h + 1) * Dh]
            kh = qkv_b[:, D + h * Dh:D + (h + 1) * Dh]
            vh = qkv_b[:, 2 * D + h * Dh:2 * D + (h + 1) * Dh]
            s = _mxu_nt(qh, kh)                               # (S, S), scale folded in
            s = s - jnp.max(s, axis=-1, keepdims=True)
            p = jnp.exp(s)
            p = p * pl.reciprocal(jnp.sum(p, axis=-1, keepdims=True), approx=True)
            heads.append(_mxu(p, vh))                         # (S, Dh)
        per_batch.append(jnp.concatenate(heads, axis=-1))     # (S, D)
    attn_in = per_batch[0] if bt == 1 else jnp.concatenate(per_batch, axis=0)
    attn = _mxu(attn_in, wo) + bo_ref[0]                      # single K=D matmul

    # ---- residual + LayerNorm 1 (post-LN, PyTorch norm_first=False) ----
    x1 = _layernorm(x + attn, ln1g_ref[0], ln1b_ref[0], eps)

    # ---- FFN: Linear -> ReLU -> Linear ----
    ff = jnp.maximum(_mxu(x1, w1_ref[0]) + b1_ref[0], 0.0)
    ff = _mxu(ff, w2_ref[0]) + b2_ref[0]

    # ---- residual + LayerNorm 2 ----
    x2 = _layernorm(x1 + ff, ln2g_ref[0], ln2b_ref[0], eps)
    x_scr[...] = x2

    # ---- after the last layer: recon_node_1 + transpose(1,2) + recon_node_2 ----
    @pl.when(l == pl.num_programs(1) - 1)
    def _():
        h1 = _mxu(x2, r1w_ref[...]) + r1b_ref[...]             # (M, n_node)
        for b in range(bt):
            h1_b = h1[b * S:(b + 1) * S, :]                    # (S, n_node)
            # (E, S) @ (S, n_node): no transpose of h1 needed; output is
            # lane-dense in n_node; the wrapper swaps to (n_node, E).
            node_t = _mxu(r2wt_ref[...], h1_b) + r2b_ref[...]  # (E, n_node)
            out_ref[b] = node_t.astype(out_ref.dtype)


# ----------------------------------------------------------------------------
# Batch-packing heuristic
# ----------------------------------------------------------------------------
def _pick_bt(B, S, m_target=128):
    """Largest divisor of B such that Bt*S <= m_target, preferring to keep at
    least 2 grid steps on the parallel axis (v7x megacore)."""
    best = 1
    for d in range(1, B + 1):
        if B % d != 0 or d * S > m_target:
            continue
        if (B // d) >= 2 or B == 1:
            best = d
    return best


# ----------------------------------------------------------------------------
# Wrapper: one pallas_call for the whole forward
# ----------------------------------------------------------------------------
def reconstructor_forward(src, params):
    """Equivalent of Reconstructor.forward(src) with train_adj=False, adapter=None."""
    cfg = params["cfg"]
    B, S, D = src.shape
    L = cfg["n_layers"]
    F = cfg["dim_ff"]
    n_node = cfg["n_node"]
    E = cfg["node_recon_dim"]

    bt = _pick_bt(B, S)
    nb = B // bt

    kernel = functools.partial(
        _reconstructor_layer_kernel, bt=bt, nhead=cfg["nhead"], eps=1e-5)

    def layer_spec(shape):
        # per-layer weight block: index follows the layer grid axis -> pipelined DMAs,
        # only ~2 layers resident in VMEM at once.
        n = len(shape)
        return pl.BlockSpec((1,) + shape, lambda b, l, _n=n: (l,) + (0,) * _n)

    def const_spec(shape):
        # whole-array block, constant index -> fetched once, stays VMEM-resident.
        n = len(shape)
        return pl.BlockSpec(shape, lambda b, l, _n=n: (0,) * _n)

    out_t = pl.pallas_call(
        kernel,
        out_shape=jax.ShapeDtypeStruct((B, E, n_node), src.dtype),
        grid=(nb, L),
        in_specs=[
            pl.BlockSpec((bt, S, D), lambda b, l: (b, 0, 0)),   # src (read at l==0)
            layer_spec((D, 3 * D)), layer_spec((1, 3 * D)),      # wqkv, bqkv
            layer_spec((D, D)),     layer_spec((1, D)),          # wo, bo
            layer_spec((1, D)),     layer_spec((1, D)),          # ln1 gamma, beta
            layer_spec((D, F)),     layer_spec((1, F)),          # ffn w1, b1
            layer_spec((F, D)),     layer_spec((1, D)),          # ffn w2, b2
            layer_spec((1, D)),     layer_spec((1, D)),          # ln2 gamma, beta
            const_spec((D, n_node)), const_spec((1, n_node)),    # recon1 w, b
            const_spec((E, S)),      const_spec((E, 1)),         # recon2 w (out,in), b
        ],
        out_specs=pl.BlockSpec((bt, E, n_node), lambda b, l: (b, 0, 0)),
        scratch_shapes=[pltpu.VMEM((bt * S, D), jnp.float32)],   # residual stream carry
        compiler_params=pltpu.CompilerParams(
            dimension_semantics=("parallel", "arbitrary"),
            vmem_limit_bytes=48 * 1024 * 1024,                   # safe on v5e/v6e/v7x
        ),
    )(
        src,
        params["wqkv"], params["bqkv"], params["wo"], params["bo"],
        params["ln1_g"], params["ln1_b"],
        params["w1"], params["b1"], params["w2"], params["b2"],
        params["ln2_g"], params["ln2_b"],
        params["recon1_w"], params["recon1_b"],
        params["recon2_wt"], params["recon2_b"],
    )

    # Kernel emits (B, E, n_node) (lane-dense store); present the module's layout.
    node_mat = jnp.swapaxes(out_t, 1, 2)                         # (B, n_node, E)

    # recon_adj is None (train_adj=False)
    return node_mat, None


# ----------------------------------------------------------------------------
# Deterministic parameter construction (stacked per-layer weights, bf16 matmul weights)
# ----------------------------------------------------------------------------
def init_params(key, *, d_model, nhead, dim_ff, n_layers, n_reg, n_node, node_recon_dim):
    D, F, L, E = d_model, dim_ff, n_layers, node_recon_dim

    def dense(k, shape):
        return 0.02 * jax.random.normal(k, shape, jnp.float32)

    keys = jax.random.split(key, 6)

    # Fold the 1/sqrt(Dh) attention scale into the Q block of the QKV projection.
    scale = 1.0 / ((D // nhead) ** 0.5)
    wqkv = dense(keys[0], (L, D, 3 * D))
    wqkv = wqkv.at[:, :, :D].multiply(scale)
    bqkv = jnp.zeros((L, 1, 3 * D), jnp.float32)
    bqkv = bqkv.at[:, :, :D].multiply(scale)

    params = dict(
        cfg=dict(nhead=nhead, n_layers=L, dim_ff=F,
                 n_node=n_node, node_recon_dim=E),
        wqkv=wqkv.astype(jnp.bfloat16),
        bqkv=bqkv,
        wo=dense(keys[1], (L, D, D)).astype(jnp.bfloat16),
        bo=jnp.zeros((L, 1, D), jnp.float32),
        ln1_g=jnp.ones((L, 1, D), jnp.float32),
        ln1_b=jnp.zeros((L, 1, D), jnp.float32),
        w1=dense(keys[2], (L, D, F)).astype(jnp.bfloat16),
        b1=jnp.zeros((L, 1, F), jnp.float32),
        w2=dense(keys[3], (L, F, D)).astype(jnp.bfloat16),
        b2=jnp.zeros((L, 1, D), jnp.float32),
        ln2_g=jnp.ones((L, 1, D), jnp.float32),
        ln2_b=jnp.zeros((L, 1, D), jnp.float32),
        recon1_w=dense(keys[4], (D, n_node)).astype(jnp.bfloat16),
        recon1_b=jnp.zeros((1, n_node), jnp.float32),
        # recon_node_2 weight kept in the native PyTorch (out_features, in_features)
        # layout so the kernel needs no transpose of the activations.
        recon2_wt=dense(keys[5], (E, n_reg)).astype(jnp.bfloat16),
        recon2_b=jnp.zeros((E, 1), jnp.float32),
    )
    return params


# ----------------------------------------------------------------------------
if __name__ == "__main__":
    # Module-consistent small sizes:
    #   input_sizes = {'n_reg': 8, 'n_node': 16, 'node_attr': 4, 'edge_attr': 1}
    #   encoder.d_model = 32, nhead = 4, dim_feedforward = 64, 2 encoder layers
    B, n_reg, n_node, node_attr = 2, 8, 16, 4
    d_model, nhead, dim_ff, n_layers = 32, 4, 64, 2

    key = jax.random.PRNGKey(0)
    k_src, k_par = jax.random.split(key)
    src = jax.random.normal(k_src, (B, n_reg, d_model), jnp.float32)

    params = init_params(
        k_par, d_model=d_model, nhead=nhead, dim_ff=dim_ff, n_layers=n_layers,
        n_reg=n_reg, n_node=n_node, node_recon_dim=node_attr,
    )

    node_mat, adj_mat = reconstructor_forward(src, params)
    node_mat = jax.block_until_ready(node_mat)

    assert node_mat.shape == (B, n_node, node_attr), node_mat.shape
    assert adj_mat is None
    assert bool(jnp.all(jnp.isfinite(node_mat)))
    print("KERNEL_OK")
</pallas_src>

<mosaic_0001>
module attributes {stable_mosaic.version = 11 : i64} {
  func.func @_reconstructor_layer_kernel(%arg0: i32, %arg1: i32, %arg2: memref<1x8x32xf32, #tpu.memory_space<vmem>>, %arg3: memref<1x32x96xbf16, #tpu.memory_space<vmem>>, %arg4: memref<1x1x96xf32, #tpu.memory_space<vmem>>, %arg5: memref<1x32x32xbf16, #tpu.memory_space<vmem>>, %arg6: memref<1x1x32xf32, #tpu.memory_space<vmem>>, %arg7: memref<1x1x32xf32, #tpu.memory_space<vmem>>, %arg8: memref<1x1x32xf32, #tpu.memory_space<vmem>>, %arg9: memref<1x32x64xbf16, #tpu.memory_space<vmem>>, %arg10: memref<1x1x64xf32, #tpu.memory_space<vmem>>, %arg11: memref<1x64x32xbf16, #tpu.memory_space<vmem>>, %arg12: memref<1x1x32xf32, #tpu.memory_space<vmem>>, %arg13: memref<1x1x32xf32, #tpu.memory_space<vmem>>, %arg14: memref<1x1x32xf32, #tpu.memory_space<vmem>>, %arg15: memref<32x16xbf16, #tpu.memory_space<vmem>>, %arg16: memref<1x16xf32, #tpu.memory_space<vmem>>, %arg17: memref<4x8xbf16, #tpu.memory_space<vmem>>, %arg18: memref<4x1xf32, #tpu.memory_space<vmem>>, %arg19: memref<1x4x16xf32, #tpu.memory_space<vmem>>, %arg20: memref<8x32xf32, #tpu.memory_space<vmem>>) attributes {dimension_semantics = [#tpu.dimension_semantics<parallel>, #tpu.dimension_semantics<arbitrary>], iteration_bounds = array<i64: 2, 2>, scalar_prefetch = 0 : i64, scratch_operands = 1 : i64, tpu.core_type = #tpu.core_type<tc>, window_params = [{transform_indices = @transform_0, window_bounds = array<i64: 1, 8, 32>}, {transform_indices = @transform_1, window_bounds = array<i64: 1, 32, 96>}, {transform_indices = @transform_2, window_bounds = array<i64: 1, 1, 96>}, {transform_indices = @transform_3, window_bounds = array<i64: 1, 32, 32>}, {transform_indices = @transform_4, window_bounds = array<i64: 1, 1, 32>}, {transform_indices = @transform_5, window_bounds = array<i64: 1, 1, 32>}, {transform_indices = @transform_6, window_bounds = array<i64: 1, 1, 32>}, {transform_indices = @transform_7, window_bounds = array<i64: 1, 32, 64>}, {transform_indices = @transform_8, window_bounds = array<i64: 1, 1, 64>}, {transform_indices = @transform_9, window_bounds = array<i64: 1, 64, 32>}, {transform_indices = @transform_10, window_bounds = array<i64: 1, 1, 32>}, {transform_indices = @transform_11, window_bounds = array<i64: 1, 1, 32>}, {transform_indices = @transform_12, window_bounds = array<i64: 1, 1, 32>}, {pipeline_mode = #tpu.pipeline_mode<synchronous>, transform_indices = @transform_13, window_bounds = array<i64: 32, 16>}, {pipeline_mode = #tpu.pipeline_mode<synchronous>, transform_indices = @transform_14, window_bounds = array<i64: 1, 16>}, {pipeline_mode = #tpu.pipeline_mode<synchronous>, transform_indices = @transform_15, window_bounds = array<i64: 4, 8>}, {pipeline_mode = #tpu.pipeline_mode<synchronous>, transform_indices = @transform_16, window_bounds = array<i64: 4, 1>}, {transform_indices = @transform_17, window_bounds = array<i64: 1, 4, 16>}]} {
    %c0_i32 = arith.constant 0 : i32
    %0 = arith.cmpi eq, %arg1, %c0_i32 : i32
    %1 = arith.extui %0 : i1 to i32
    %c0_i32_0 = arith.constant 0 : i32
    %2 = arith.cmpi ne, %1, %c0_i32_0 : i32
    scf.if %2 {
      %c0_71 = arith.constant 0 : index
      %c0_72 = arith.constant 0 : index
      %c0_73 = arith.constant 0 : index
      %173 = vector.load %arg2[%c0_71, %c0_72, %c0_73] : memref<1x8x32xf32, #tpu.memory_space<vmem>>, vector<1x8x32xf32>
      %174 = vector.shape_cast %173 : vector<1x8x32xf32> to vector<8x32xf32>
      %c0_74 = arith.constant 0 : index
      %c0_75 = arith.constant 0 : index
      %175 = vector.load %arg20[%c0_74, %c0_75] : memref<8x32xf32, #tpu.memory_space<vmem>>, vector<8x32xf32>
      tpu.vector_store %arg20[%c0_74, %c0_75], %174 {strides = array<i32>} : memref<8x32xf32, #tpu.memory_space<vmem>>, vector<8x32xf32>,
    } else {
    }
    %c0 = arith.constant 0 : index
    %c0_1 = arith.constant 0 : index
    %3 = vector.load %arg20[%c0, %c0_1] : memref<8x32xf32, #tpu.memory_space<vmem>>, vector<8x32xf32>
    %c0_2 = arith.constant 0 : index
    %c0_3 = arith.constant 0 : index
    %c0_4 = arith.constant 0 : index
    %4 = vector.load %arg3[%c0_2, %c0_3, %c0_4] : memref<1x32x96xbf16, #tpu.memory_space<vmem>>, vector<1x32x96xbf16>
    %5 = vector.shape_cast %4 : vector<1x32x96xbf16> to vector<32x96xbf16>
    %6 = arith.truncf %3 : vector<8x32xf32> to vector<8x32xbf16>
    %cst = arith.constant dense<0.000000e+00> : vector<8x96xf32>
    %7 = tpu.matmul %6, %5, %cst {dimension_numbers = #tpu.dot_dimension_numbers<[1], [0], [0], [1], [0, 0, 1, 1], [], []>} : vector<8x32xbf16>, vector<32x96xbf16>, vector<8x96xf32> -> vector<8x96xf32>
    %c0_5 = arith.constant 0 : index
    %c0_6 = arith.constant 0 : index
    %c0_7 = arith.constant 0 : index
    %8 = vector.load %arg4[%c0_5, %c0_6, %c0_7] : memref<1x1x96xf32, #tpu.memory_space<vmem>>, vector<1x1x96xf32>
    %9 = vector.shape_cast %8 : vector<1x1x96xf32> to vector<1x96xf32>
    %10 = vector.broadcast %9 : vector<1x96xf32> to vector<8x96xf32>
    %11 = arith.addf %7, %10 : vector<8x96xf32>
    %c0_8 = arith.constant 0 : index
    %c0_9 = arith.constant 0 : index
    %c0_10 = arith.constant 0 : index
    %12 = vector.load %arg5[%c0_8, %c0_9, %c0_10] : memref<1x32x32xbf16, #tpu.memory_space<vmem>>, vector<1x32x32xbf16>
    %13 = vector.shape_cast %12 : vector<1x32x32xbf16> to vector<32x32xbf16>
    %14 = vector.extract_strided_slice %11 {offsets = [0, 0], sizes = [8, 8], strides = [1, 1]} : vector<8x96xf32> to vector<8x8xf32>
    %15 = vector.extract_strided_slice %11 {offsets = [0, 32], sizes = [8, 8], strides = [1, 1]} : vector<8x96xf32> to vector<8x8xf32>
    %16 = vector.extract_strided_slice %11 {offsets = [0, 64], sizes = [8, 8], strides = [1, 1]} : vector<8x96xf32> to vector<8x8xf32>
    %17 = arith.truncf %14 : vector<8x8xf32> to vector<8x8xbf16>
    %18 = arith.truncf %15 : vector<8x8xf32> to vector<8x8xbf16>
    %cst_11 = arith.constant dense<0.000000e+00> : vector<8x8xf32>
    %19 = tpu.matmul %17, %18, %cst_11 {dimension_numbers = #tpu.dot_dimension_numbers<[1], [1], [0], [0], [0, 0, 1, 0], [], []>} : vector<8x8xbf16>, vector<8x8xbf16>, vector<8x8xf32> -> vector<8x8xf32>
    %cst_12 = arith.constant dense<0xFF800000> : vector<8xf32>
    %20 = vector.multi_reduction <maximumf>, %19, %cst_12 [1] : vector<8x8xf32> to vector<8xf32>
    %21 = vector.shape_cast %20 : vector<8xf32> to vector<8x1xf32>
    %22 = vector.broadcast %21 : vector<8x1xf32> to vector<8x8xf32>
    %23 = arith.subf %19, %22 : vector<8x8xf32>
    %24 = math.exp %23 : vector<8x8xf32>
    %cst_13 = arith.constant dense<0.000000e+00> : vector<8xf32>
    %25 = vector.multi_reduction <add>, %24, %cst_13 [1] : vector<8x8xf32> to vector<8xf32>
    %26 = vector.shape_cast %25 : vector<8xf32> to vector<8x1xf32>
    %27 = tpu.reciprocal %26 {approx = true} : vector<8x1xf32> -> vector<8x1xf32>
    %28 = vector.broadcast %27 : vector<8x1xf32> to vector<8x8xf32>
    %29 = arith.mulf %24, %28 : vector<8x8xf32>
    %30 = arith.truncf %29 : vector<8x8xf32> to vector<8x8xbf16>
    %31 = arith.truncf %16 : vector<8x8xf32> to vector<8x8xbf16>
    %cst_14 = arith.constant dense<0.000000e+00> : vector<8x8xf32>
    %32 = tpu.matmul %30, %31, %cst_14 {dimension_numbers = #tpu.dot_dimension_numbers<[1], [0], [0], [1], [0, 0, 1, 1], [], []>} : vector<8x8xbf16>, vector<8x8xbf16>, vector<8x8xf32> -> vector<8x8xf32>
    %33 = vector.extract_strided_slice %11 {offsets = [0, 8], sizes = [8, 8], strides = [1, 1]} : vector<8x96xf32> to vector<8x8xf32>
    %34 = vector.extract_strided_slice %11 {offsets = [0, 40], sizes = [8, 8], strides = [1, 1]} : vector<8x96xf32> to vector<8x8xf32>
    %35 = vector.extract_strided_slice %11 {offsets = [0, 72], sizes = [8, 8], strides = [1, 1]} : vector<8x96xf32> to vector<8x8xf32>
    %36 = arith.truncf %33 : vector<8x8xf32> to vector<8x8xbf16>
    %37 = arith.truncf %34 : vector<8x8xf32> to vector<8x8xbf16>
    %cst_15 = arith.constant dense<0.000000e+00> : vector<8x8xf32>
    %38 = tpu.matmul %36, %37, %cst_15 {dimension_numbers = #tpu.dot_dimension_numbers<[1], [1], [0], [0], [0, 0, 1, 0], [], []>} : vector<8x8xbf16>, vector<8x8xbf16>, vector<8x8xf32> -> vector<8x8xf32>
    %cst_16 = arith.constant dense<0xFF800000> : vector<8xf32>
    %39 = vector.multi_reduction <maximumf>, %38, %cst_16 [1] : vector<8x8xf32> to vector<8xf32>
    %40 = vector.shape_cast %39 : vector<8xf32> to vector<8x1xf32>
    %41 = vector.broadcast %40 : vector<8x1xf32> to vector<8x8xf32>
    %42 = arith.subf %38, %41 : vector<8x8xf32>
    %43 = math.exp %42 : vector<8x8xf32>
    %cst_17 = arith.constant dense<0.000000e+00> : vector<8xf32>
    %44 = vector.multi_reduction <add>, %43, %cst_17 [1] : vector<8x8xf32> to vector<8xf32>
    %45 = vector.shape_cast %44 : vector<8xf32> to vector<8x1xf32>
    %46 = tpu.reciprocal %45 {approx = true} : vector<8x1xf32> -> vector<8x1xf32>
    %47 = vector.broadcast %46 : vector<8x1xf32> to vector<8x8xf32>
    %48 = arith.mulf %43, %47 : vector<8x8xf32>
    %49 = arith.truncf %48 : vector<8x8xf32> to vector<8x8xbf16>
    %50 = arith.truncf %35 : vector<8x8xf32> to vector<8x8xbf16>
    %cst_18 = arith.constant dense<0.000000e+00> : vector<8x8xf32>
    %51 = tpu.matmul %49, %50, %cst_18 {dimension_numbers = #tpu.dot_dimension_numbers<[1], [0], [0], [1], [0, 0, 1, 1], [], []>} : vector<8x8xbf16>, vector<8x8xbf16>, vector<8x8xf32> -> vector<8x8xf32>
    %52 = vector.extract_strided_slice %11 {offsets = [0, 16], sizes = [8, 8], strides = [1, 1]} : vector<8x96xf32> to vector<8x8xf32>
    %53 = vector.extract_strided_slice %11 {offsets = [0, 48], sizes = [8, 8], strides = [1, 1]} : vector<8x96xf32> to vector<8x8xf32>
    %54 = vector.extract_strided_slice %11 {offsets = [0, 80], sizes = [8, 8], strides = [1, 1]} : vector<8x96xf32> to vector<8x8xf32>
    %55 = arith.truncf %52 : vector<8x8xf32> to vector<8x8xbf16>
    %56 = arith.truncf %53 : vector<8x8xf32> to vector<8x8xbf16>
    %cst_19 = arith.constant dense<0.000000e+00> : vector<8x8xf32>
    %57 = tpu.matmul %55, %56, %cst_19 {dimension_numbers = #tpu.dot_dimension_numbers<[1], [1], [0], [0], [0, 0, 1, 0], [], []>} : vector<8x8xbf16>, vector<8x8xbf16>, vector<8x8xf32> -> vector<8x8xf32>
    %cst_20 = arith.constant dense<0xFF800000> : vector<8xf32>
    %58 = vector.multi_reduction <maximumf>, %57, %cst_20 [1] : vector<8x8xf32> to vector<8xf32>
    %59 = vector.shape_cast %58 : vector<8xf32> to vector<8x1xf32>
    %60 = vector.broadcast %59 : vector<8x1xf32> to vector<8x8xf32>
    %61 = arith.subf %57, %60 : vector<8x8xf32>
    %62 = math.exp %61 : vector<8x8xf32>
    %cst_21 = arith.constant dense<0.000000e+00> : vector<8xf32>
    %63 = vector.multi_reduction <add>, %62, %cst_21 [1] : vector<8x8xf32> to vector<8xf32>
    %64 = vector.shape_cast %63 : vector<8xf32> to vector<8x1xf32>
    %65 = tpu.reciprocal %64 {approx = true} : vector<8x1xf32> -> vector<8x1xf32>
    %66 = vector.broadcast %65 : vector<8x1xf32> to vector<8x8xf32>
    %67 = arith.mulf %62, %66 : vector<8x8xf32>
    %68 = arith.truncf %67 : vector<8x8xf32> to vector<8x8xbf16>
    %69 = arith.truncf %54 : vector<8x8xf32> to vector<8x8xbf16>
    %cst_22 = arith.constant dense<0.000000e+00> : vector<8x8xf32>
    %70 = tpu.matmul %68, %69, %cst_22 {dimension_numbers = #tpu.dot_dimension_numbers<[1], [0], [0], [1], [0, 0, 1, 1], [], []>} : vector<8x8xbf16>, vector<8x8xbf16>, vector<8x8xf32> -> vector<8x8xf32>
    %71 = vector.extract_strided_slice %11 {offsets = [0, 24], sizes = [8, 8], strides = [1, 1]} : vector<8x96xf32> to vector<8x8xf32>
    %72 = vector.extract_strided_slice %11 {offsets = [0, 56], sizes = [8, 8], strides = [1, 1]} : vector<8x96xf32> to vector<8x8xf32>
    %73 = vector.extract_strided_slice %11 {offsets = [0, 88], sizes = [8, 8], strides = [1, 1]} : vector<8x96xf32> to vector<8x8xf32>
    %74 = arith.truncf %71 : vector<8x8xf32> to vector<8x8xbf16>
    %75 = arith.truncf %72 : vector<8x8xf32> to vector<8x8xbf16>
    %cst_23 = arith.constant dense<0.000000e+00> : vector<8x8xf32>
    %76 = tpu.matmul %74, %75, %cst_23 {dimension_numbers = #tpu.dot_dimension_numbers<[1], [1], [0], [0], [0, 0, 1, 0], [], []>} : vector<8x8xbf16>, vector<8x8xbf16>, vector<8x8xf32> -> vector<8x8xf32>
    %cst_24 = arith.constant dense<0xFF800000> : vector<8xf32>
    %77 = vector.multi_reduction <maximumf>, %76, %cst_24 [1] : vector<8x8xf32> to vector<8xf32>
    %78 = vector.shape_cast %77 : vector<8xf32> to vector<8x1xf32>
    %79 = vector.broadcast %78 : vector<8x1xf32> to vector<8x8xf32>
    %80 = arith.subf %76, %79 : vector<8x8xf32>
    %81 = math.exp %80 : vector<8x8xf32>
    %cst_25 = arith.constant dense<0.000000e+00> : vector<8xf32>
    %82 = vector.multi_reduction <add>, %81, %cst_25 [1] : vector<8x8xf32> to vector<8xf32>
    %83 = vector.shape_cast %82 : vector<8xf32> to vector<8x1xf32>
    %84 = tpu.reciprocal %83 {approx = true} : vector<8x1xf32> -> vector<8x1xf32>
    %85 = vector.broadcast %84 : vector<8x1xf32> to vector<8x8xf32>
    %86 = arith.mulf %81, %85 : vector<8x8xf32>
    %87 = arith.truncf %86 : vector<8x8xf32> to vector<8x8xbf16>
    %88 = arith.truncf %73 : vector<8x8xf32> to vector<8x8xbf16>
    %cst_26 = arith.constant dense<0.000000e+00> : vector<8x8xf32>
    %89 = tpu.matmul %87, %88, %cst_26 {dimension_numbers = #tpu.dot_dimension_numbers<[1], [0], [0], [1], [0, 0, 1, 1], [], []>} : vector<8x8xbf16>, vector<8x8xbf16>, vector<8x8xf32> -> vector<8x8xf32>
    %90 = tpu.concatenate %32, %51, %70, %89 in 1 : vector<8x8xf32>, vector<8x8xf32>, vector<8x8xf32>, vector<8x8xf32> -> vector<8x32xf32>
    %91 = arith.truncf %90 : vector<8x32xf32> to vector<8x32xbf16>
    %cst_27 = arith.constant dense<0.000000e+00> : vector<8x32xf32>
    %92 = tpu.matmul %91, %13, %cst_27 {dimension_numbers = #tpu.dot_dimension_numbers<[1], [0], [0], [1], [0, 0, 1, 1], [], []>} : vector<8x32xbf16>, vector<32x32xbf16>, vector<8x32xf32> -> vector<8x32xf32>
    %c0_28 = arith.constant 0 : index
    %c0_29 = arith.constant 0 : index
    %c0_30 = arith.constant 0 : index
    %93 = vector.load %arg6[%c0_28, %c0_29, %c0_30] : memref<1x1x32xf32, #tpu.memory_space<vmem>>, vector<1x1x32xf32>
    %94 = vector.shape_cast %93 : vector<1x1x32xf32> to vector<1x32xf32>
    %95 = vector.broadcast %94 : vector<1x32xf32> to vector<8x32xf32>
    %96 = arith.addf %92, %95 : vector<8x32xf32>
    %97 = arith.addf %3, %96 : vector<8x32xf32>
    %c0_31 = arith.constant 0 : index
    %c0_32 = arith.constant 0 : index
    %c0_33 = arith.constant 0 : index
    %98 = vector.load %arg7[%c0_31, %c0_32, %c0_33] : memref<1x1x32xf32, #tpu.memory_space<vmem>>, vector<1x1x32xf32>
    %99 = vector.shape_cast %98 : vector<1x1x32xf32> to vector<1x32xf32>
    %c0_34 = arith.constant 0 : index
    %c0_35 = arith.constant 0 : index
    %c0_36 = arith.constant 0 : index
    %100 = vector.load %arg8[%c0_34, %c0_35, %c0_36] : memref<1x1x32xf32, #tpu.memory_space<vmem>>, vector<1x1x32xf32>
    %101 = vector.shape_cast %100 : vector<1x1x32xf32> to vector<1x32xf32>
    %cst_37 = arith.constant dense<0.000000e+00> : vector<8xf32>
    %102 = vector.multi_reduction <add>, %97, %cst_37 [1] : vector<8x32xf32> to vector<8xf32>
    %103 = vector.shape_cast %102 : vector<8xf32> to vector<8x1xf32>
    %cst_38 = arith.constant 3.200000e+01 : f32
    %104 = vector.broadcast %cst_38 : f32 to vector<8x1xf32>
    %105 = arith.divf %103, %104 : vector<8x1xf32>
    %106 = vector.broadcast %105 : vector<8x1xf32> to vector<8x32xf32>
    %107 = arith.subf %97, %106 : vector<8x32xf32>
    %108 = arith.mulf %107, %107 : vector<8x32xf32>
    %cst_39 = arith.constant dense<0.000000e+00> : vector<8xf32>
    %109 = vector.multi_reduction <add>, %108, %cst_39 [1] : vector<8x32xf32> to vector<8xf32>
    %110 = vector.shape_cast %109 : vector<8xf32> to vector<8x1xf32>
    %cst_40 = arith.constant 3.200000e+01 : f32
    %111 = vector.broadcast %cst_40 : f32 to vector<8x1xf32>
    %112 = arith.divf %110, %111 : vector<8x1xf32>
    %113 = vector.broadcast %105 : vector<8x1xf32> to vector<8x32xf32>
    %114 = arith.subf %97, %113 : vector<8x32xf32>
    %cst_41 = arith.constant 9.99999974E-6 : f32
    %115 = vector.broadcast %cst_41 : f32 to vector<8x1xf32>
    %116 = arith.addf %112, %115 : vector<8x1xf32>
    %117 = math.rsqrt %116 : vector<8x1xf32>
    %118 = vector.broadcast %117 : vector<8x1xf32> to vector<8x32xf32>
    %119 = arith.mulf %114, %118 : vector<8x32xf32>
    %120 = vector.broadcast %99 : vector<1x32xf32> to vector<8x32xf32>
    %121 = arith.mulf %119, %120 : vector<8x32xf32>
    %122 = vector.broadcast %101 : vector<1x32xf32> to vector<8x32xf32>
    %123 = arith.addf %121, %122 : vector<8x32xf32>
    %c0_42 = arith.constant 0 : index
    %c0_43 = arith.constant 0 : index
    %c0_44 = arith.constant 0 : index
    %124 = vector.load %arg9[%c0_42, %c0_43, %c0_44] : memref<1x32x64xbf16, #tpu.memory_space<vmem>>, vector<1x32x64xbf16>
    %125 = vector.shape_cast %124 : vector<1x32x64xbf16> to vector<32x64xbf16>
    %126 = arith.truncf %123 : vector<8x32xf32> to vector<8x32xbf16>
    %cst_45 = arith.constant dense<0.000000e+00> : vector<8x64xf32>
    %127 = tpu.matmul %126, %125, %cst_45 {dimension_numbers = #tpu.dot_dimension_numbers<[1], [0], [0], [1], [0, 0, 1, 1], [], []>} : vector<8x32xbf16>, vector<32x64xbf16>, vector<8x64xf32> -> vector<8x64xf32>
    %c0_46 = arith.constant 0 : index
    %c0_47 = arith.constant 0 : index
    %c0_48 = arith.constant 0 : index
    %128 = vector.load %arg10[%c0_46, %c0_47, %c0_48] : memref<1x1x64xf32, #tpu.memory_space<vmem>>, vector<1x1x64xf32>
    %129 = vector.shape_cast %128 : vector<1x1x64xf32> to vector<1x64xf32>
    %130 = vector.broadcast %129 : vector<1x64xf32> to vector<8x64xf32>
    %131 = arith.addf %127, %130 : vector<8x64xf32>
    %cst_49 = arith.constant 0.000000e+00 : f32
    %132 = vector.broadcast %cst_49 : f32 to vector<8x64xf32>
    %133 = arith.maximumf %131, %132 : vector<8x64xf32>
    %c0_50 = arith.constant 0 : index
    %c0_51 = arith.constant 0 : index
    %c0_52 = arith.constant 0 : index
    %134 = vector.load %arg11[%c0_50, %c0_51, %c0_52] : memref<1x64x32xbf16, #tpu.memory_space<vmem>>, vector<1x64x32xbf16>
    %135 = vector.shape_cast %134 : vector<1x64x32xbf16> to vector<64x32xbf16>
    %136 = arith.truncf %133 : vector<8x64xf32> to vector<8x64xbf16>
    %cst_53 = arith.constant dense<0.000000e+00> : vector<8x32xf32>
    %137 = tpu.matmul %136, %135, %cst_53 {dimension_numbers = #tpu.dot_dimension_numbers<[1], [0], [0], [1], [0, 0, 1, 1], [], []>} : vector<8x64xbf16>, vector<64x32xbf16>, vector<8x32xf32> -> vector<8x32xf32>
    %c0_54 = arith.constant 0 : index
    %c0_55 = arith.constant 0 : index
    %c0_56 = arith.constant 0 : index
    %138 = vector.load %arg12[%c0_54, %c0_55, %c0_56] : memref<1x1x32xf32, #tpu.memory_space<vmem>>, vector<1x1x32xf32>
    %139 = vector.shape_cast %138 : vector<1x1x32xf32> to vector<1x32xf32>
    %140 = vector.broadcast %139 : vector<1x32xf32> to vector<8x32xf32>
    %141 = arith.addf %137, %140 : vector<8x32xf32>
    %142 = arith.addf %123, %141 : vector<8x32xf32>
    %c0_57 = arith.constant 0 : index
    %c0_58 = arith.constant 0 : index
    %c0_59 = arith.constant 0 : index
    %143 = vector.load %arg13[%c0_57, %c0_58, %c0_59] : memref<1x1x32xf32, #tpu.memory_space<vmem>>, vector<1x1x32xf32>
    %144 = vector.shape_cast %143 : vector<1x1x32xf32> to vector<1x32xf32>
    %c0_60 = arith.constant 0 : index
    %c0_61 = arith.constant 0 : index
    %c0_62 = arith.constant 0 : index
    %145 = vector.load %arg14[%c0_60, %c0_61, %c0_62] : memref<1x1x32xf32, #tpu.memory_space<vmem>>, vector<1x1x32xf32>
    %146 = vector.shape_cast %145 : vector<1x1x32xf32> to vector<1x32xf32>
    %cst_63 = arith.constant dense<0.000000e+00> : vector<8xf32>
    %147 = vector.multi_reduction <add>, %142, %cst_63 [1] : vector<8x32xf32> to vector<8xf32>
    %148 = vector.shape_cast %147 : vector<8xf32> to vector<8x1xf32>
    %cst_64 = arith.constant 3.200000e+01 : f32
    %149 = vector.broadcast %cst_64 : f32 to vector<8x1xf32>
    %150 = arith.divf %148, %149 : vector<8x1xf32>
    %151 = vector.broadcast %150 : vector<8x1xf32> to vector<8x32xf32>
    %152 = arith.subf %142, %151 : vector<8x32xf32>
    %153 = arith.mulf %152, %152 : vector<8x32xf32>
    %cst_65 = arith.constant dense<0.000000e+00> : vector<8xf32>
    %154 = vector.multi_reduction <add>, %153, %cst_65 [1] : vector<8x32xf32> to vector<8xf32>
    %155 = vector.shape_cast %154 : vector<8xf32> to vector<8x1xf32>
    %cst_66 = arith.constant 3.200000e+01 : f32
    %156 = vector.broadcast %cst_66 : f32 to vector<8x1xf32>
    %157 = arith.divf %155, %156 : vector<8x1xf32>
    %158 = vector.broadcast %150 : vector<8x1xf32> to vector<8x32xf32>
    %159 = arith.subf %142, %158 : vector<8x32xf32>
    %cst_67 = arith.constant 9.99999974E-6 : f32
    %160 = vector.broadcast %cst_67 : f32 to vector<8x1xf32>
    %161 = arith.addf %157, %160 : vector<8x1xf32>
    %162 = math.rsqrt %161 : vector<8x1xf32>
    %163 = vector.broadcast %162 : vector<8x1xf32> to vector<8x32xf32>
    %164 = arith.mulf %159, %163 : vector<8x32xf32>
    %165 = vector.broadcast %144 : vector<1x32xf32> to vector<8x32xf32>
    %166 = arith.mulf %164, %165 : vector<8x32xf32>
    %167 = vector.broadcast %146 : vector<1x32xf32> to vector<8x32xf32>
    %168 = arith.addf %166, %167 : vector<8x32xf32>
    %c0_68 = arith.constant 0 : index
    %c0_69 = arith.constant 0 : index
    %169 = vector.load %arg20[%c0_68, %c0_69] : memref<8x32xf32, #tpu.memory_space<vmem>>, vector<8x32xf32>
    tpu.vector_store %arg20[%c0_68, %c0_69], %168 {strides = array<i32>} : memref<8x32xf32, #tpu.memory_space<vmem>>, vector<8x32xf32>,
    %c1_i32 = arith.constant 1 : i32
    %170 = arith.cmpi eq, %arg1, %c1_i32 : i32
    %171 = arith.extui %170 : i1 to i32
    %c0_i32_70 = arith.constant 0 : i32
    %172 = arith.cmpi ne, %171, %c0_i32_70 : i32
    scf.if %172 {
      %c0_71 = arith.constant 0 : index
      %c0_72 = arith.constant 0 : index
      %173 = vector.load %arg15[%c0_71, %c0_72] : memref<32x16xbf16, #tpu.memory_space<vmem>>, vector<32x16xbf16>
      %174 = arith.truncf %168 : vector<8x32xf32> to vector<8x32xbf16>
      %cst_73 = arith.constant dense<0.000000e+00> : vector<8x16xf32>
      %175 = tpu.matmul %174, %173, %cst_73 {dimension_numbers = #tpu.dot_dimension_numbers<[1], [0], [0], [1], [0, 0, 1, 1], [], []>} : vector<8x32xbf16>, vector<32x16xbf16>, vector<8x16xf32> -> vector<8x16xf32>
      %c0_74 = arith.constant 0 : index
      %c0_75 = arith.constant 0 : index
      %176 = vector.load %arg16[%c0_74, %c0_75] : memref<1x16xf32, #tpu.memory_space<vmem>>, vector<1x16xf32>
      %177 = vector.broadcast %176 : vector<1x16xf32> to vector<8x16xf32>
      %178 = arith.addf %175, %177 : vector<8x16xf32>
      %c0_76 = arith.constant 0 : index
      %c0_77 = arith.constant 0 : index
      %179 = vector.load %arg17[%c0_76, %c0_77] : memref<4x8xbf16, #tpu.memory_space<vmem>>, vector<4x8xbf16>
      %180 = arith.truncf %178 : vector<8x16xf32> to vector<8x16xbf16>
      %cst_78 = arith.constant dense<0.000000e+00> : vector<4x16xf32>
      %181 = tpu.matmul %179, %180, %cst_78 {dimension_numbers = #tpu.dot_dimension_numbers<[1], [0], [0], [1], [0, 0, 1, 1], [], []>} : vector<4x8xbf16>, vector<8x16xbf16>, vector<4x16xf32> -> vector<4x16xf32>
      %c0_79 = arith.constant 0 : index
      %c0_80 = arith.constant 0 : index
      %182 = vector.load %arg18[%c0_79, %c0_80] : memref<4x1xf32, #tpu.memory_space<vmem>>, vector<4x1xf32>
      %183 = vector.broadcast %182 : vector<4x1xf32> to vector<4x16xf32>
      %184 = arith.addf %181, %183 : vector<4x16xf32>
      %c0_81 = arith.constant 0 : index
      %c0_82 = arith.constant 0 : index
      %c0_83 = arith.constant 0 : index
      %185 = vector.load %arg19[%c0_81, %c0_82, %c0_83] : memref<1x4x16xf32, #tpu.memory_space<vmem>>, vector<1x4x16xf32>
      %186 = vector.shape_cast %185 : vector<1x4x16xf32> to vector<4x16xf32>
      %187 = vector.shape_cast %184 : vector<4x16xf32> to vector<1x4x16xf32>
      tpu.vector_store %arg19[%c0_81, %c0_82, %c0_83], %187 {strides = array<i32>} : memref<1x4x16xf32, #tpu.memory_space<vmem>>, vector<1x4x16xf32>,
    } else {
    }
    return
  }
  func.func @transform_0(%arg0: i32, %arg1: i32) -> (i32, i32, i32) {
    %c0_i32 = arith.constant 0 : i32
    %c0_i32_0 = arith.constant 0 : i32
    %c0_i32_1 = arith.constant 0 : i32
    return %arg0, %c0_i32, %c0_i32_0 : i32, i32, i32
  }
  func.func @transform_1(%arg0: i32, %arg1: i32) -> (i32, i32, i32) {
    %c0_i32 = arith.constant 0 : i32
    %c0_i32_0 = arith.constant 0 : i32
    %c0_i32_1 = arith.constant 0 : i32
    return %arg1, %c0_i32, %c0_i32_0 : i32, i32, i32
  }
  func.func @transform_2(%arg0: i32, %arg1: i32) -> (i32, i32, i32) {
    %c0_i32 = arith.constant 0 : i32
    %c0_i32_0 = arith.constant 0 : i32
    %c0_i32_1 = arith.constant 0 : i32
    return %arg1, %c0_i32, %c0_i32_0 : i32, i32, i32
  }
  func.func @transform_3(%arg0: i32, %arg1: i32) -> (i32, i32, i32) {
    %c0_i32 = arith.constant 0 : i32
    %c0_i32_0 = arith.constant 0 : i32
    %c0_i32_1 = arith.constant 0 : i32
    return %arg1, %c0_i32, %c0_i32_0 : i32, i32, i32
  }
  func.func @transform_4(%arg0: i32, %arg1: i32) -> (i32, i32, i32) {
    %c0_i32 = arith.constant 0 : i32
    %c0_i32_0 = arith.constant 0 : i32
    %c0_i32_1 = arith.constant 0 : i32
    return %arg1, %c0_i32, %c0_i32_0 : i32, i32, i32
  }
  func.func @transform_5(%arg0: i32, %arg1: i32) -> (i32, i32, i32) {
    %c0_i32 = arith.constant 0 : i32
    %c0_i32_0 = arith.constant 0 : i32
    %c0_i32_1 = arith.constant 0 : i32
    return %arg1, %c0_i32, %c0_i32_0 : i32, i32, i32
  }
  func.func @transform_6(%arg0: i32, %arg1: i32) -> (i32, i32, i32) {
    %c0_i32 = arith.constant 0 : i32
    %c0_i32_0 = arith.constant 0 : i32
    %c0_i32_1 = arith.constant 0 : i32
    return %arg1, %c0_i32, %c0_i32_0 : i32, i32, i32
  }
  func.func @transform_7(%arg0: i32, %arg1: i32) -> (i32, i32, i32) {
    %c0_i32 = arith.constant 0 : i32
    %c0_i32_0 = arith.constant 0 : i32
    %c0_i32_1 = arith.constant 0 : i32
    return %arg1, %c0_i32, %c0_i32_0 : i32, i32, i32
  }
  func.func @transform_8(%arg0: i32, %arg1: i32) -> (i32, i32, i32) {
    %c0_i32 = arith.constant 0 : i32
    %c0_i32_0 = arith.constant 0 : i32
    %c0_i32_1 = arith.constant 0 : i32
    return %arg1, %c0_i32, %c0_i32_0 : i32, i32, i32
  }
  func.func @transform_9(%arg0: i32, %arg1: i32) -> (i32, i32, i32) {
    %c0_i32 = arith.constant 0 : i32
    %c0_i32_0 = arith.constant 0 : i32
    %c0_i32_1 = arith.constant 0 : i32
    return %arg1, %c0_i32, %c0_i32_0 : i32, i32, i32
  }
  func.func @transform_10(%arg0: i32, %arg1: i32) -> (i32, i32, i32) {
    %c0_i32 = arith.constant 0 : i32
    %c0_i32_0 = arith.constant 0 : i32
    %c0_i32_1 = arith.constant 0 : i32
    return %arg1, %c0_i32, %c0_i32_0 : i32, i32, i32
  }
  func.func @transform_11(%arg0: i32, %arg1: i32) -> (i32, i32, i32) {
    %c0_i32 = arith.constant 0 : i32
    %c0_i32_0 = arith.constant 0 : i32
    %c0_i32_1 = arith.constant 0 : i32
    return %arg1, %c0_i32, %c0_i32_0 : i32, i32, i32
  }
  func.func @transform_12(%arg0: i32, %arg1: i32) -> (i32, i32, i32) {
    %c0_i32 = arith.constant 0 : i32
    %c0_i32_0 = arith.constant 0 : i32
    %c0_i32_1 = arith.constant 0 : i32
    return %arg1, %c0_i32, %c0_i32_0 : i32, i32, i32
  }
  func.func @transform_13(%arg0: i32, %arg1: i32) -> (i32, i32) {
    %c0_i32 = arith.constant 0 : i32
    %c0_i32_0 = arith.constant 0 : i32
    %c0_i32_1 = arith.constant 0 : i32
    return %c0_i32, %c0_i32_0 : i32, i32
  }
  func.func @transform_14(%arg0: i32, %arg1: i32) -> (i32, i32) {
    %c0_i32 = arith.constant 0 : i32
    %c0_i32_0 = arith.constant 0 : i32
    %c0_i32_1 = arith.constant 0 : i32
    return %c0_i32, %c0_i32_0 : i32, i32
  }
  func.func @transform_15(%arg0: i32, %arg1: i32) -> (i32, i32) {
    %c0_i32 = arith.constant 0 : i32
    %c0_i32_0 = arith.constant 0 : i32
    %c0_i32_1 = arith.constant 0 : i32
    return %c0_i32, %c0_i32_0 : i32, i32
  }
  func.func @transform_16(%arg0: i32, %arg1: i32) -> (i32, i32) {
    %c0_i32 = arith.constant 0 : i32
    %c0_i32_0 = arith.constant 0 : i32
    %c0_i32_1 = arith.constant 0 : i32
    return %c0_i32, %c0_i32_0 : i32, i32
  }
  func.func @transform_17(%arg0: i32, %arg1: i32) -> (i32, i32, i32) {
    %c0_i32 = arith.constant 0 : i32
    %c0_i32_0 = arith.constant 0 : i32
    %c0_i32_1 = arith.constant 0 : i32
    return %arg0, %c0_i32, %c0_i32_0 : i32, i32, i32
  }
}

</mosaic_0001>

<bundles_post_ra>
// kernel: tpu_custom_call.1
= control target key start
LH: loop header
LB: loop body
LE: loop exit
PB: predicated region body
PF: predicated region fallthrough
CT: control target
= control target key end

     0   :  { %s2979_s0 = inlined_call_operand.vmem [shape: f32[2,8,32], index: 0, kind: input, shape index: {}]   ;;  %s2980_s1 = inlined_call_operand.vmem [shape: bf16[2,32,96], index: 1, kind: input, shape index: {}]   ;;  %s2981_s2 = inlined_call_operand.vmem [shape: f32[2,1,96], index: 2, kind: input, shape index: {}]   ;;  %s2982_s3 = inlined_call_operand.vmem [shape: bf16[2,32,32], index: 3, kind: input, shape index: {}]   ;;  %s2983_s4 = inlined_call_operand.vmem [shape: f32[2,1,32], index: 4, kind: input, shape index: {}]   ;;  %s2984_s5 = inlined_call_operand.vmem [shape: f32[2,1,32], index: 5, kind: input, shape index: {}]   ;;  %s2985_s6 = inlined_call_operand.vmem [shape: f32[2,1,32], index: 6, kind: input, shape index: {}]   ;;  %s2986_s7 = inlined_call_operand.vmem [shape: bf16[2,32,64], index: 7, kind: input, shape index: {}]   ;;  %s2987_s8 = inlined_call_operand.vmem [shape: f32[2,1,64], index: 8, kind: input, shape index: {}]   ;;  %s2988_s9 = inlined_call_operand.vmem [shape: bf16[2,64,32], index: 9, kind: input, shape index: {}]   ;;  %s2989_s10 = inlined_call_operand.hbm [shape: f32[2,1,32], index: 10, kind: input, shape index: {}]   ;;  %s2990_s11 = inlined_call_operand.vmem [shape: f32[2,1,32], index: 11, kind: input, shape index: {}]   ;;  %s2991_s12 = inlined_call_operand.vmem [shape: f32[2,1,32], index: 12, kind: input, shape index: {}]   ;;  %s2992_s13 = inlined_call_operand.vmem [shape: bf16[32,16], index: 13, kind: input, shape index: {}]   ;;  %s2993_s14 = inlined_call_operand.vmem [shape: f32[1,16], index: 14, kind: input, shape index: {}]   ;;  %s2994_s15 = inlined_call_operand.vmem [shape: bf16[4,8], index: 15, kind: input, shape index: {}]   ;;  %s2995_s16 = inlined_call_operand.vmem [shape: f32[4,1], index: 16, kind: input, shape index: {}]   ;;  %s2996_s17 = inlined_call_operand.hbm [shape: f32[2,4,16], index: 17, kind: output, shape index: {}]  }
   0x1   :  { %3016 = sst [smem:[#allocation25_spill]] %s2979_s0 }
   0x2   :  { %3017 = sst [smem:[#allocation26_spill]] %s2980_s1 }
   0x3   :  { %3018 = sst [smem:[#allocation27_spill]] %s2982_s3 }
   0x4   :  { %3019 = sst [smem:[#allocation28_spill]] %s2988_s9 }
   0x5   :  { %3020 = sst [smem:[#allocation29_spill]] %s2989_s10 }
   0x6   :  { %3021 = sst [smem:[#allocation30_spill]] %s2991_s12 }
   0x7   :  { %3022 = sst [smem:[#allocation31_spill]] %s2992_s13 }
   0x8   :  { %3023 = sst [smem:[#allocation32_spill]] %s2993_s14 }
   0x9   :  { %3024 = sst [smem:[#allocation33_spill]] %s2994_s15 }
   0xa   :  { %3025 = sst [smem:[#allocation34_spill]] %s2995_s16 }
   0xb   :  { %3026 = sst [smem:[#allocation35_spill]] %s2996_s17 }
   0xc   :  { %22 = vsyncpa [#allocation4], 0 }
   0xd   :  { %24 = vsyncpa [#allocation4 + $0x1], 0 }
   0xe   :  { %25 = vsyncpa [#allocation5], 0 }
   0xf   :  { %27 = vsyncpa [#allocation5 + $0x1], 0  ;;  %s2540_s24 = smov 0   ;;  %s2542_s25 = smov 0  }
  0x10   :  { %s2544_s26 = smov 0   ;;  %s2546_s27 = smov 0  }
  0x11   :  { %s2548_s28 = smov 0   ;;  %s2550_s29 = smov 0  }
  0x12   :  { %s2552_s0 = smov 0   ;;  %s2554_s30 = smov 0  }
  0x13   :  { %s2556_s18 = smov 0   ;;  %s2558_s19 = smov 0  }
  0x14   :  { %s2560_s1 = smov 0  }
  0x15 LB: > { %3027 = sst [smem:[#allocation9_spill]] %s2387_s24  ;;  %s1927_s20 = sadd.s32 4294967295, %s2427_s1   ;;  %s2427_s1 = sphi %s2560_s1, %s33_s1   ;;  %s2423_s19 = sphi %s2558_s19, %s3085_s19   ;;  %s2419_s18 = sphi %s2556_s18, %s3084_s18   ;;  %s2415_s30 = sphi %s2554_s30, %s3083_s30   ;;  %s2411_s0 = sphi %s2552_s0, %s3082_s0   ;;  %s2407_s29 = sphi %s2550_s29, %s3081_s29   ;;  %s2403_s28 = sphi %s2548_s28, %s3080_s28   ;;  %s2399_s27 = sphi %s2546_s27, %s3079_s27   ;;  %s2395_s26 = sphi %s2544_s26, %s3078_s26   ;;  %s2391_s25 = sphi %s2542_s25, %s3077_s25   ;;  %s2387_s24 = sphi %s2540_s24, %s3076_s24  }
  0x16   : > { %3028 = sst [smem:[#allocation10_spill]] %s2391_s25  ;;  %s1928_s21 = sadd.s32 4294967294, %s2427_s1  }
  0x17   : > { %3029 = sst [smem:[#allocation11_spill]] %s2395_s26  ;;  %s42_s22 = sadd.s32 1, %s2419_s18 }
  0x18   : > { %3030 = sst [smem:[#allocation12_spill]] %s2403_s28  ;;  %s45_s23 = sadd.s32 1, %s2423_s19 }
  0x19   : > { %3031 = sst [smem:[#allocation13_spill]] %s2407_s29  ;;  %p43_p0 = scmp.ge.s32.totalorder %s42_s22, 2 }
  0x1a   : > { %3032 = sst [smem:[#allocation14_spill]] %s2415_s30  ;;  %s312_s17 = sadd.s32 1, %s2407_s29 }
  0x1b   : > { %3033 = sst [smem:[#allocation15_spill]] %s2419_s18  ;;  %p319_p1 = scmp.ne.s32.totalorder %s2407_s29, %s2403_s28 }
  0x1c   : > { %3034 = sst [smem:[#allocation16_spill]] %s2423_s19  ;;  %p320_p2 = scmp.eq.s32.totalorder %s2427_s1, 0 }
  0x1d   : > { %3035 = sst [smem:[#allocation17_spill]] %s2427_s1  ;;  %s3087_s22 = smov (%p43_p0, %s42_s22), 0 }
  0x1e   : > { %3036 = sst [smem:[#allocation18_spill]] %s3087_s22  ;;  %s3089_s23 = smov (!%p43_p0, %s45_s23), %s2423_s19 }
  0x1f   : > { %s309_s15 = ssub.s32 %s2419_s18, %s3087_s22  ;;  %p2606_p3 = por %p320_p2, %p319_p1 }
  0x20   : > { %p47_p4 = scmp.ge.s32.totalorder %s3089_s23, 2  ;;  %p310_p5 = scmp.eq.s32.totalorder %s309_s15, 0 }
  0x21   : > { %p325_p6 = scmp.ne.s32.totalorder %s2403_s28, %s2399_s27  ;;  %p326_p7 = scmp.eq.s32.totalorder %s1927_s20, 0 }
  0x22   : > { %s3091_s23 = smov (%p47_p4, %s3089_s23), 0  ;;  %s474_s12 = sadd.s32 1, %s2395_s26 }
  0x23   : > { %3038 = sst [smem:[#allocation19_spill]] %s3091_s23  ;;  %p2616_p8 = por %p326_p7, %p325_p6 }
  0x24   : > { %s2614_s16 = scalar_select %p310_p5, %s2407_s29, %s312_s17  }
  0x25   : > { %s471_s13 = ssub.s32 %s2423_s19, %s3091_s23  ;;  %p484_p10 = scmp.ne.s32.totalorder %s2395_s26, %s2391_s25 }
  0x26   : > { %3039 = sst [smem:[#allocation20_spill]] %s2614_s16  ;;  %p472_p9 = scmp.eq.s32.totalorder %s471_s13, 0 }
  0x27   : > { %p485_p11 = scmp.eq.s32.totalorder %s1927_s20, 3  ;;  %p490_p13 = scmp.ne.s32.totalorder %s2391_s25, %s2387_s24 }
  0x28   : > { %s2626_s15 = scalar_select %p472_p9, %s2395_s26, %s474_s12  }
  0x29   : > { %p2628_p12 = por %p485_p11, %p484_p10  ;;  %p491_p0 = scmp.eq.s32.totalorder %s1928_s21, 3 }
  0x2a   : > { %3041 = sst [smem:[#allocation21_spill]] %s2626_s15  ;;  %p2133_p1 = scmp.lt.s32.totalorder %s2427_s1, 4 }
  0x2b   : > { %s3042_s27 = scalar_select %p2628_p12, 1, 0 }
  0x2c   : > { %s592_s17 = sand.u32 1, %s2407_s29   ;;  %p2636_p2 = por %p491_p0, %p490_p13 }
  0x2d   : > { %3043 = sst [smem:[#allocation22_spill]] %s3042_s27  ;;  %s1931_s13 = sshll.u32 %s2419_s18, 4 }
  0x2e   : > { %s3044_s16 = scalar_select %p2636_p2, 1, 0 }
  0x2f   : > { %s3046_s10 = sld [smem:[#allocation29_spill]]  ;;  %s595_s12 = scalar_lea.vmem [#allocation3], %s592_s17 }
  0x30   : > { %3045 = sst [smem:[#allocation23_spill]] %s3044_s16  ;;  %s602_s20 = sshll.u32 %s595_s12, 4  ;;  %s2646_s20 = int_to_ptr.vmem [resolvable:$true] %s602_s20 }
  0x31   : > { %p2650_p4 = pnand %p2133_p1, %p2606_p3  ;;  %s593_s19 = scalar_lea.sflag [#allocation4], %s592_s17 }
  0x33   : > { %p2277_p9 = pneg %p2650_p4 }
  0x35   : > { %s2644_s9 = scalar_lea.hbm %s3046_s10, %s1931_s13  ;;  %s2280_s14 = scalar_lea.hbm %s3046_s10, 32 }
  0x36   : > { %s2275_s23 = scalar_lea.hbm %s2644_s9, 16  ;;  %p2281_p3 = scmp.lt.u32.totalorder %s2644_s9, %s3046_s10 }
  0x37   : > { %p2276_p7 = scmp.ne.s32.totalorder %s2644_s9, %s2275_s23  ;;  %p2282_p13 = scmp.lt.u32.totalorder %s2280_s14, %s2275_s23 }
  0x38   : > { %p2284_p1 = scmp.lt.u32.totalorder %s2275_s23, %s2644_s9 }
  0x39   : > { %p2278_p10 = pnand %p2277_p9, %p2276_p7  ;;  %p2283_p0 = por %p2282_p13, %p2281_p3 }
  0x3b   : > { %p2279_p11 = pneg %p2278_p10  ;;  %p2285_p5 = por %p2284_p1, %p2283_p0 }
  0x3d   : > { %p2286_p6 = pnand %p2285_p5, %p2279_p11 }
  0x3f   : > { %2289 = shalt.err (!%p2286_p6)
}
  0x40   : > { %s2290_s17 = scalar_lea.vmem %s2646_s20, 16  ;;  %s2429_s13 = smov [#allocation3]  }
  0x41   : > { %p2291_p7 = scmp.ne.s32.totalorder %s2646_s20, %s2290_s17  ;;  %s2295_s12 = sshll.u32 %s2429_s13, 4  ;;  %s2296_s12 = int_to_ptr.vmem [resolvable:$false] %s2295_s12 }
  0x42   : > { %s2297_s29 = scalar_lea.vmem %s2296_s12, 32  ;;  %p2298_p12 = scmp.lt.s32.totalorder %s2646_s20, %s2296_s12 }
  0x43   : > { %p2293_p10 = pnand %p2291_p7, %p2277_p9  ;;  %p2299_p3 = scmp.lt.s32.totalorder %s2297_s29, %s2290_s17 }
  0x45   : > { %p2294_p2 = pneg %p2293_p10  ;;  %p2300_p13 = por %p2299_p3, %p2298_p12 }
  0x47   : > { %p2301_p0 = pnand %p2300_p13, %p2294_p2 }
  0x49   : > { %2304 = shalt.err (!%p2301_p0)
}
  0x4a   : > { %2128 = dma.hbm_to_vmem [thread:$0]  (!%p2650_p4), %s2644_s9, 16, %s2646_s20, %s593_s19  }
  0x4b   : > { %p3048_p5 = scmp.lt.s32.totalorder %s2427_s1, 5  ;;  %p3049_p6 = scmp.ge.s32.totalorder %s2427_s1, 1 }
  0x4d   : > { %p620_p9 = pnand %p3049_p6, %p3048_p5 }
  0x4f   : > { %623 = sbr.rel (%p620_p9) target bundleno = 3122 (0xc32), region = 88 }
  0x56   : > { %s625_s18 = sand.u32 1, %s2403_s28  }
  0x57   : > { %s626_s23 = scalar_lea.sflag [#allocation4], %s625_s18  ;;  %s2686_s14 = scalar_lea.vmem [#allocation3], %s625_s18 }
  0x58   : > { %3050 = sst [smem:[#allocation24_spill]] %s2686_s14 }
  0x59   : > { %2378 = dma.done.wait (%p2616_p8), %s626_s23, 16  }
  0x5a   : > { %2380 = vsyncadd (%p2616_p8), %s626_s23, 4294967280  ;;  %s3005_s9 = sand.u32 1, %s2391_s25   ;;  %p723_p12 = scmp.lt.s32.totalorder %s2415_s30, 1 }
  0x5b   : > { %s2696_s20 = sshll.u32 %s3005_s9, 2  ;;  %p727_p2 = scmp.lt.s32.totalorder %s2411_s0, 1 }
  0x5c   : > { %s724_s21 = scalar_select %p723_p12, %s2415_s30, 1 }
  0x5d   : > { %s2701_s19 = scalar_select %p727_p2, %s2411_s0, 1 }
  0x5e   : > { %s1934_s22 = sshll.u32 %s724_s21, 3  ;;  %s3051_s12 = sld [smem:[#allocation25_spill]] }
  0x5f   : > { %s1984_s18 = sshll.u32 %s2701_s19, 4  ;;  %s3052_s10 = sld [smem:[#allocation26_spill]] }
  0x60   : > { %s3053_s3 = sld [smem:[#allocation27_spill]]  ;;  %s2734_s15 = scalar_lea.vmem %s2986_s7, %s1984_s18 }
  0x61   : > { %s756_s16 = scalar_lea.vmem %s2987_s8, %s2701_s19  ;;  %s764_s30 = scalar_lea.vmem %s2990_s11, %s2701_s19 }
  0x62   : > { %s3054_s13 = sld [smem:[#allocation28_spill]]  ;;  %p1943_p8 = scmp.ne.s32.totalorder %s2411_s0, 0 }
  0x63   : > { %vm774_vm0 = vcmask (!%p1943_p8), 261120  }
  0x64   : > { %s726_s29 = scalar_lea.vmem %s3051_s12, %s1934_s22 }
  0x65   : > { %s731_s28 = scalar_lea.vmem %s3052_s10, %s1984_s18  ;;  %s3055_s10 = sld [smem:[#allocation30_spill]]  ;;  %v773_v0 = vld [vmem:[%s726_s29] sm:$0xff] (!%p1943_p8) }
  0x66   : > { %s2717_s27 = scalar_lea.vmem %s3053_s3, %s1984_s18  ;;  %s1987_s3 = sshll.u32 %s2701_s19, 5  ;;  %775 = vst.msk [vmem:[#allocation2] sm:$0xff] (!%p1943_p8), %vm774_vm0, %v773_v0 }
  0x67   : > { %s722_s18 = scalar_lea.vmem [#allocation6], %s2696_s20  ;;  %772 = sbr.rel (%p1943_p8) target bundleno = 110 (0x6e), region = 96 }
  0x68   : > { %s2748_s14 = scalar_lea.vmem %s3054_s13, %s1987_s3 }
  0x6b   : > { %s767_s23 = scalar_lea.vmem %s3055_s10, %s2701_s19 }
  0x6e PF: > { %v2242_v1 = vld [vmem:[%s731_s28] sm:$0xff]   ;;  %v2430_v2 = vmov 0.0   ;;  %v2243_v3 = vld [vmem:[%s731_s28 + $0x8] sm:$0xff]   ;;  %vm2431_vm1 = vmmov 0   ;;  %vm801_vm2 = vcmask 261120   ;;  %s3056_s29 = scalar_lea.vmem %s2981_s2, %s2701_s19  ;;  %s2432_s13 = smov 120  }
  0x6f   : > { %2023 = vmatprep.subr.bf16.mxu0 %v2430_v2  ;;  %2031 = vmatprep.subr.bf16.mxu1 %v2430_v2  ;;  %v2760_v4 = vld [vmem:[#allocation2] sm:$0xff]  ;;  %s2433_s10 = smov 96   ;;  %s2434_s26 = smov 80   ;;  %vm853_vm3 = vcmask 64512   ;;  %vm917_vm4 = vcmask 1043456   ;;  %vm1304_vm5 = vcmask 130048  }
  0x70   : > { %2024 = vmatpush3.bf16.msra.mxu0 %v2242_v1  ;;  %2027 = vmatprep.mubr.msk.bf16.mxu0 %vm2431_vm1, %v2430_v2  ;;  %v781_v5 = vpack.c.bf16 %v2760_v4, %v2760_v4  ;;  %v1944_v6 = vld [vmem:[%s3056_s29] ss:$0 sm:$0xff]  ;;  %s2435_s24 = smov 88   ;;  %s2436_s1 = smov 72   ;;  %vm1306_vm6 = vcmask 195584   ;;  %vm1510_vm7 = vcmask 523264  }
  0x71   : > { %2025 = vmatprep.subr.bf16.mxu0 %v2430_v2  ;;  %2033 = vmatprep.mubr.msk.bf16.mxu1 %vm2431_vm1, %v2430_v2  ;;  %s2437_s25 = smov 112   ;;  %s2438_s21 = smov 104  }
  0x72   : > { %s2439_s17 = smov 56   ;;  %s2440_s22 = smov 64  }
  0x73   : > { %s2441_s12 = smov 40   ;;  %s2442_s9 = smov 48  }
  0x74   : > { %2026 = vmatpush3.bf16.msra.mxu0 %v2243_v3  ;;  %s2443_s3 = smov 8   ;;  %s2444_s28 = smov 16  }
  0x75   : > { %2037 = vmatprep.subr.bf16.mxu0 %v2430_v2  ;;  %s2445_s29 = smov 24   ;;  %p1974_p4 = scmp.ne.s32.totalorder %s2411_s0, 1 }
  0x76   : > { %vm2447_vm8 = vmmov (!%p1974_p4), 0   ;;  %vm1710_vm9 = vcmask (!%p1974_p4), 125952  }
  0x77   : > { %2028 = vmatmul.mubr.msk.bf16.vlgmr.msra.gmra.mrb[0].mxu0 %vm801_vm2, %v781_v5 }
  0x78   : > { %2039 = vmatprep.mubr.msk.bf16.mxu0 %vm2431_vm1, %v2430_v2 }
 0x14a   : > { %v839_v7 = vpop.f32.mrb[0].mxu0 }
 0x14b   : > { %v840_v8 = vadd.f32 %v1944_v6, %v839_v7  ;;  %v2029_v9 = vpop.f32.mrb[1].mxu0 }
 0x14c   : > { %v842_v10 = vpop.f32.mrb[2].mxu0 }
 0x14d   : > { %v2776_v11 = vpack.c.bf16 %v840_v8, %v840_v8  ;;  %v2030_v12 = vpop.f32.mrb[3].mxu0 }
 0x14f   : > { %961 = vrot.lane.b32.xlu1 %v2776_v11, %s2432_s13  ;;  %851 = vrot.lane.b32.xlu0 %v2776_v11, %s2433_s10  ;;  %s3057_s10 = scalar_lea.vmem %s2983_s4, %s2701_s19  ;;  %s3062_s13 = sld [smem:[#allocation31_spill]] (!%p1974_p4) }
 0x153   : > { %1073 = vrot.lane.b32.xlu1 %v2776_v11, %s2434_s26  ;;  %963 = vrot.lane.b32.xlu0 %v2776_v11, %s2435_s24 }
 0x157   : > { %1183 = vrot.lane.b32.xlu1 %v2776_v11, %s2436_s1  ;;  %1071 = vrot.lane.b32.xlu0 %v2776_v11, %s2437_s25 }
 0x15b   : > { %1181 = vrot.lane.b32.xlu0 %v2776_v11, %s2438_s21  ;;  %s3059_s21 = scalar_lea.vmem %s2985_s6, %s2701_s19 }
 0x1c1   : > { %v852_v13 = vpop.permute.xlu0 %851  ;;  %v962_v16 = vpop.permute.xlu1 %961 }
 0x1c2   : > { %v858_v14 = vsel %vm853_vm3, %v852_v13, 0 }
 0x1c3   : > { %2032 = vmatpush3.bf16.xpose.msra.mxu1 %v858_v14 }
 0x1c4   : > { %2043 = vmatprep.subr.bf16.mxu1 %v2430_v2 }
 0x1c5   : > { %v964_v15 = vpop.permute.xlu0 %963  ;;  %v1074_v18 = vpop.permute.xlu1 %1073 }
 0x1c6   : > { %v969_v17 = vsel %vm853_vm3, %v964_v15, 0  ;;  %v1079_v19 = vsel %vm853_vm3, %v1074_v18, 0 }
 0x1c9   : > { %v1184_v20 = vpop.permute.xlu1 %1183  ;;  %v1072_v21 = vpop.permute.xlu0 %1071 }
 0x1ca   : > { %2034 = vmatmul.mubr.msk.bf16.vlgmr.msra.gmra.mrb[0].mxu1 %vm853_vm3, %v2776_v11  ;;  %v1189_v22 = vsel %vm853_vm3, %v1184_v20, 0 }
 0x1cb   : > { %2044 = vmatpush3.bf16.xpose.msra.mxu1 %v969_v17  ;;  %2045 = vmatprep.mubr.msk.bf16.mxu1 %vm2431_vm1, %v2430_v2 }
 0x1cc   : > { %2055 = vmatprep.subr.bf16.mxu1 %v2430_v2 }
 0x1cd   : > { %v1182_v23 = vpop.permute.xlu0 %1181 }
 0x1d2   : > { %2046 = vmatmul.mubr.msk.bf16.vlgmr.msra.gmra.mrb[4].mxu1 %vm853_vm3, %v962_v16 }
 0x1d3   : > { %2056 = vmatpush3.bf16.xpose.msra.mxu1 %v1079_v19  ;;  %2057 = vmatprep.mubr.msk.bf16.mxu1 %vm2431_vm1, %v2430_v2 }
 0x1d4   : > { %2067 = vmatprep.subr.bf16.mxu1 %v2430_v2 }
 0x1da   : > { %2058 = vmatmul.mubr.msk.bf16.vlgmr.msra.gmra.mrb[8].mxu1 %vm853_vm3, %v1072_v21 }
 0x1db   : > { %2068 = vmatpush3.bf16.xpose.msra.mxu1 %v1189_v22  ;;  %2069 = vmatprep.mubr.msk.bf16.mxu1 %vm2431_vm1, %v2430_v2 }
 0x1dc   : > { %2079 = vmatprep.subr.bf16.mxu1 %v2430_v2 }
 0x1e2   : > { %2070 = vmatmul.mubr.msk.bf16.vlgmr.msra.gmra.mrb[12].mxu1 %vm853_vm3, %v1182_v23 }
 0x1e3   : > { %2083 = vmatprep.mubr.msk.bf16.mxu1 %vm2431_vm1, %v2430_v2 }
 0x29d   : > { %v894_v24 = vpop.f32.mrb[0].mxu1 }
 0x29e   : > { %v2035_v25 = vpop.f32.mrb[1].mxu1  ;;  %v900_v26 = vsel %vm853_vm3, %v894_v24, -inf }
 0x29f   : > { %901 = vmax.xlane.f32.xlu1 %v900_v26  ;;  %v897_v27 = vpop.f32.mrb[2].mxu1 }
 0x2a0   : > { %v2036_v28 = vpop.f32.mrb[3].mxu1 }
 0x2a5   : > { %v1005_v29 = vpop.f32.mrb[4].mxu1 }
 0x2a6   : > { %v2047_v30 = vpop.f32.mrb[5].mxu1  ;;  %v1011_v31 = vsel %vm853_vm3, %v1005_v29, -inf }
 0x2a7   : > { %1012 = vmax.xlane.f32.xlu0 %v1011_v31  ;;  %v1008_v32 = vpop.f32.mrb[6].mxu1 }
 0x2a8   : > { %v2048_v33 = vpop.f32.mrb[7].mxu1 }
 0x2ad   : > { %v1115_v34 = vpop.f32.mrb[8].mxu1 }
 0x2ae   : > { %v2059_v35 = vpop.f32.mrb[9].mxu1  ;;  %v1121_v36 = vsel %vm853_vm3, %v1115_v34, -inf }
 0x2af   : > { %1122 = vmax.xlane.f32.xlu0 %v1121_v36  ;;  %v1118_v37 = vpop.f32.mrb[10].mxu1  ;;  %v2245_v35 = vld [vmem:[%s2717_s27 + $0x8] sm:$0xff]  }
 0x2b0   : > { %v2060_v38 = vpop.f32.mrb[11].mxu1 }
 0x2b5   : > { %v1225_v39 = vpop.f32.mrb[12].mxu1 }
 0x2b6   : > { %v2071_v40 = vpop.f32.mrb[13].mxu1  ;;  %v1231_v41 = vsel %vm853_vm3, %v1225_v39, -inf }
 0x2b7   : > { %1232 = vmax.xlane.f32.xlu1 %v1231_v41  ;;  %v1228_v42 = vpop.f32.mrb[14].mxu1 }
 0x2b8   : > { %v2072_v43 = vpop.f32.mrb[15].mxu1 }
 0x32c   : > { %v902_v44 = vpop.xlane.xlu1 %901 }
 0x32d   : > { %v903_v45 = vsub.f32 %v894_v24, %v902_v44 }
 0x32f   : > { %v904_v46 = vmul.f32 1.442695, %v903_v45 }
 0x331   : > { %2252 = vpow2.f32 %v904_v46 }
 0x334   : > { %v1013_v47 = vpop.xlane.xlu0 %1012 }
 0x335   : > { %v1014_v48 = vsub.f32 %v1005_v29, %v1013_v47 }
 0x337   : > { %v1015_v49 = vmul.f32 1.442695, %v1014_v48 }
 0x339   : > { %2254 = vpow2.f32 %v1015_v49 }
 0x33b   : > { %v2253_v50 = vpop.eup %2252 }
 0x33c   : > { %v1123_v51 = vpop.xlane.xlu0 %1122  ;;  %v906_v52 = vsel %vm853_vm3, %v2253_v50, 0.0 }
 0x33d   : > { %v1124_v53 = vsub.f32 %v1115_v34, %v1123_v51  ;;  %907 = vadd.xlane.f32.xlu0 %v906_v52  ;;  %v2244_v34 = vld [vmem:[%s2717_s27] sm:$0xff]  }
 0x33e   : > { %2080 = vmatpush3.bf16.msra.mxu1 %v2244_v34  ;;  %v1956_v51 = vld [vmem:[%s3057_s10] ss:$0 sm:$0xff] }
 0x33f   : > { %v1125_v54 = vmul.f32 1.442695, %v1124_v53  ;;  %2081 = vmatprep.subr.bf16.mxu1 %v2430_v2 }
 0x341   : > { %2256 = vpow2.f32 %v1125_v54 }
 0x342   : > { %2082 = vmatpush3.bf16.msra.mxu1 %v2245_v35 }
 0x343   : > { %v2255_v55 = vpop.eup %2254  ;;  %2095 = vmatprep.subr.bf16.mxu1 %v2430_v2 }
 0x344   : > { %v1017_v56 = vsel %vm853_vm3, %v2255_v55, 0.0  ;;  %v1233_v59 = vpop.xlane.xlu1 %1232 }
 0x345   : > { %1018 = vadd.xlane.f32.xlu1 %v1017_v56  ;;  %v1234_v60 = vsub.f32 %v1225_v39, %v1233_v59 }
 0x347   : > { %v1235_v61 = vmul.f32 1.442695, %v1234_v60 }
 0x349   : > { %2258 = vpow2.f32 %v1235_v61 }
 0x34b   : > { %v2257_v57 = vpop.eup %2256 }
 0x34c   : > { %v1127_v58 = vsel %vm853_vm3, %v2257_v57, 0.0 }
 0x34d   : > { %1128 = vadd.xlane.f32.xlu0 %v1127_v58 }
 0x353   : > { %v2259_v62 = vpop.eup %2258 }
 0x354   : > { %v1237_v63 = vsel %vm853_vm3, %v2259_v62, 0.0 }
 0x356   : > { %1023 = vrot.lane.b32.xlu1 %v2776_v11, %s2439_s17  ;;  %s3060_s17 = sld [smem:[#allocation24_spill]] }
 0x363   : > { %912 = vrot.lane.b32.xlu0 %v2776_v11, %s2440_s22 }
 0x367   : > { %1243 = vrot.lane.b32.xlu0 %v2776_v11, %s2441_s12 }
 0x37a   : > { %1238 = vadd.xlane.f32.xlu1 %v1237_v63 }
 0x38b   : > { %1133 = vrot.lane.b32.xlu1 %v2776_v11, %s2442_s9 }
 0x3ca   : > { %v908_v0 = vpop.xlane.xlu0 %907 }
 0x3cb   : > { %2260 = vrcp.f32 %v908_v0  ;;  %v2246_v0 = vld [vmem:[%s2734_s15] sm:$0xff]  }
 0x3d2   : > { %v1019_v1 = vpop.xlane.xlu1 %1018 }
 0x3d3   : > { %2262 = vrcp.f32 %v1019_v1  ;;  %v2247_v1 = vld [vmem:[%s2734_s15 + $0x8] sm:$0xff]   ;;  %s3058_s15 = scalar_lea.vmem %s2984_s5, %s2701_s19 }
 0x3d5   : > { %v2261_v3 = vpop.eup %2260 }
 0x3d6   : > { %v910_v6 = vmul.f32 %v2261_v3, %v2253_v50  ;;  %v1024_v9 = vpop.permute.xlu1 %1023  ;;  %v2249_v3 = vld [vmem:[%s2748_s14 + $0x8] sm:$0xff]  }
 0x3d7   : > { %v1029_v13 = vsel %vm917_vm4, %v1024_v9, 0  ;;  %v1960_v9 = vld [vmem:[%s3058_s15] ss:$0 sm:$0xff]  ;;  %s3064_s15 = sld [smem:[#allocation32_spill]] (!%p1974_p4) }
 0x3d8   : > { %v911_v10 = vpack.c.bf16 %v910_v6, %v910_v6 }
 0x3da   : > { %v1129_v5 = vpop.xlane.xlu0 %1128 }
 0x3db   : > { %2264 = vrcp.f32 %v1129_v5 }
 0x3dd   : > { %v2263_v12 = vpop.eup %2262 }
 0x3de   : > { %v913_v7 = vpop.permute.xlu0 %912  ;;  %v1021_v11 = vmul.f32 %v2263_v12, %v2255_v55  ;;  %v1961_v12 = vld [vmem:[%s3059_s21] ss:$0 sm:$0xff]  ;;  %s3065_s21 = sld [smem:[#allocation33_spill]] (!%p1974_p4) }
 0x3df   : > { %v919_v8 = vsel %vm917_vm4, %v913_v7, 0 }
 0x3e0   : > { %2038 = vmatpush3.bf16.msra.mxu0 %v919_v8  ;;  %v1022_v14 = vpack.c.bf16 %v1021_v11, %v1021_v11 }
 0x3e1   : > { %2049 = vmatprep.subr.bf16.mxu0 %v2430_v2 }
 0x3e2   : > { %v1244_v20 = vpop.permute.xlu0 %1243 }
 0x3e3   : > { %2040 = vmatmul.mubr.msk.bf16.vlgmr.msra.gmra.mrb[4].mxu0 %vm853_vm3, %v911_v10  ;;  %v1249_v22 = vsel %vm917_vm4, %v1244_v20, 0 }
 0x3e4   : > { %2050 = vmatpush3.bf16.msra.mxu0 %v1029_v13  ;;  %2051 = vmatprep.mubr.msk.bf16.mxu0 %vm2431_vm1, %v2430_v2 }
 0x3e5   : > { %2061 = vmatprep.subr.bf16.mxu0 %v2430_v2  ;;  %v2265_v15 = vpop.eup %2264 }
 0x3e6   : > { %v1131_v17 = vmul.f32 %v2265_v15, %v2257_v57  ;;  %v2250_v15 = vld [vmem:[%s2748_s14 + $0x10] sm:$0xff]  }
 0x3e8   : > { %v1132_v21 = vpack.c.bf16 %v1131_v17, %v1131_v17  ;;  %v1962_v17 = vld [vmem:[%s756_s16] ss:$0 sm:$0xff] }
 0x3eb   : > { %2052 = vmatmul.mubr.msk.bf16.vlgmr.msra.gmra.mrb[8].mxu0 %vm853_vm3, %v1022_v14 }
 0x3ec   : > { %2063 = vmatprep.mubr.msk.bf16.mxu0 %vm2431_vm1, %v2430_v2 }
 0x407   : > { %v1239_v16 = vpop.xlane.xlu1 %1238 }
 0x408   : > { %2266 = vrcp.f32 %v1239_v16  ;;  %v2251_v16 = vld [vmem:[%s2748_s14 + $0x18] sm:$0xff]  }
 0x40b   : > { %v1134_v18 = vpop.permute.xlu1 %1133 }
 0x40c   : > { %v1139_v19 = vsel %vm917_vm4, %v1134_v18, 0 }
 0x40d   : > { %2062 = vmatpush3.bf16.msra.mxu0 %v1139_v19 }
 0x40e   : > { %2073 = vmatprep.subr.bf16.mxu0 %v2430_v2 }
 0x410   : > { %2064 = vmatmul.mubr.msk.bf16.vlgmr.msra.gmra.mrb[12].mxu0 %vm853_vm3, %v1132_v21 }
 0x411   : > { %2074 = vmatpush3.bf16.msra.mxu0 %v1249_v22  ;;  %2075 = vmatprep.mubr.msk.bf16.mxu0 %vm2431_vm1, %v2430_v2 }
 0x412   : > { %v2267_v23 = vpop.eup %2266  ;;  %2087 = vmatprep.subr.bf16.mxu0 %v2430_v2 }
 0x413   : > { %v1241_v24 = vmul.f32 %v2267_v23, %v2259_v62 }
 0x415   : > { %v1242_v25 = vpack.c.bf16 %v1241_v24, %v1241_v24 }
 0x418   : > { %2076 = vmatmul.mubr.msk.bf16.vlgmr.msra.gmra.mrb[16].mxu0 %vm853_vm3, %v1242_v25  ;;  %v1966_v25 = vld [vmem:[%s3060_s17] ss:$0 sm:$0xff] }
 0x419   : > { %2091 = vmatprep.mubr.msk.bf16.mxu0 %vm2431_vm1, %v2430_v2  ;;  %2088 = vmatpush3.bf16.msra.mxu0 %v2246_v0 }
 0x41a   : > { %2089 = vmatprep.subr.bf16.mxu0 %v2430_v2 }
 0x41d   : > { %2090 = vmatpush3.bf16.msra.mxu0 %v2247_v1 }
 0x4b6   : > { %v955_v26 = vpop.f32.mrb[4].mxu0 }
 0x4b7   : > { %v2041_v27 = vpop.f32.mrb[5].mxu0 }
 0x4b8   : > { %v958_v28 = vpop.f32.mrb[6].mxu0 }
 0x4b9   : > { %v2042_v29 = vpop.f32.mrb[7].mxu0 }
 0x4be   : > { %v1065_v30 = vpop.f32.mrb[8].mxu0 }
 0x4bf   : > { %1292 = vrot.lane.b32.xlu1 %v1065_v30, %s2443_s3  ;;  %v2053_v31 = vpop.f32.mrb[9].mxu0 }
 0x4c0   : > { %v1068_v32 = vpop.f32.mrb[10].mxu0 }
 0x4c1   : > { %v2054_v33 = vpop.f32.mrb[11].mxu0 }
 0x4e3   : > { %v1175_v36 = vpop.f32.mrb[12].mxu0 }
 0x4e4   : > { %1296 = vrot.lane.b32.xlu0 %v1175_v36, %s2444_s28  ;;  %v2065_v37 = vpop.f32.mrb[13].mxu0 }
 0x4e5   : > { %v1178_v38 = vpop.f32.mrb[14].mxu0 }
 0x4e6   : > { %v2066_v39 = vpop.f32.mrb[15].mxu0 }
 0x4eb   : > { %v1285_v40 = vpop.f32.mrb[16].mxu0 }
 0x4ec   : > { %1300 = vrot.lane.b32.xlu1 %v1285_v40, %s2445_s29  ;;  %v2077_v41 = vpop.f32.mrb[17].mxu0 }
 0x4ed   : > { %v1288_v42 = vpop.f32.mrb[18].mxu0  ;;  %v1972_v41 = vld [vmem:[%s764_s30] ss:$0 sm:$0xff] }
 0x4ee   : > { %v2078_v43 = vpop.f32.mrb[19].mxu0 }
 0x4ef   : > { %v1973_v43 = vld [vmem:[%s767_s23] ss:$0 sm:$0xff]  ;;  %s3063_s23 = sld [smem:[#allocation34_spill]] (!%p1974_p4) }
 0x531   : > { %v1293_v44 = vpop.permute.xlu1 %1292 }
 0x532   : > { %v1303_v46 = vsel %vm853_vm3, %v955_v26, %v1293_v44 }
 0x556   : > { %v1297_v45 = vpop.permute.xlu0 %1296 }
 0x557   : > { %v1305_v47 = vsel %vm1304_vm5, %v1303_v46, %v1297_v45  ;;  %v2273_v46 = vld [vmem:[%s3062_s13] sm:$0xff] (!%p1974_p4)  }
 0x55e   : > { %v1301_v48 = vpop.permute.xlu1 %1300 }
 0x55f   : > { %v1307_v49 = vsel %vm1306_vm6, %v1305_v47, %v1301_v48  ;;  %v2446_v47 = vmov (!%p1974_p4), 0.0   ;;  %v2274_v48 = vld [vmem:[%s3062_s13 + $0x8] sm:$0xff] (!%p1974_p4)  }
 0x560   : > { %v1308_v50 = vpack.c.bf16 %v1307_v49, %v1307_v49  ;;  %2107 = vmatprep.subr.bf16.mxu0 (!%p1974_p4), %v2446_v47 }
 0x562   : > { %2084 = vmatmul.mubr.msk.bf16.vlgmr.msra.gmra.mrb[16].mxu1 %vm801_vm2, %v1308_v50  ;;  %v1658_v50 = vld [vmem:[%s3063_s23] sm:$0xf] (!%p1974_p4) }
 0x563   : > { %2103 = vmatprep.mubr.msk.bf16.mxu1 %vm2431_vm1, %v2430_v2 }
 0x635   : > { %v1365_v52 = vpop.f32.mrb[16].mxu1 }
 0x636   : > { %v1366_v53 = vadd.f32 %v1956_v51, %v1365_v52  ;;  %v2085_v54 = vpop.f32.mrb[17].mxu1  ;;  %v2448_v51 = vmov (!%p1974_p4), 0   ;;  %v1975_v52 = vld [vmem:[%s3064_s15] ss:$0 sm:$0xff] (!%p1974_p4) }
 0x637   : > { %v1368_v55 = vpop.f32.mrb[18].mxu1  ;;  %2272 = vset.pattern.permute.xlu0 (!%p1974_p4), %v2448_v51 }
 0x638   : > { %v2086_v56 = vpop.f32.mrb[19].mxu1  ;;  %v1371_v57 = vadd.f32 %v1366_v53, %v2760_v4  ;;  %v2248_v4 = vld [vmem:[%s2748_s14] sm:$0xff]  }
 0x639   : > { %2096 = vmatpush3.bf16.msra.mxu1 %v2248_v4 }
 0x63a   : > { %v1374_v58 = vsel %vm801_vm2, %v1371_v57, 0.0  ;;  %2097 = vmatprep.subr.bf16.mxu1 %v2430_v2 }
 0x63b   : > { %1375 = vadd.xlane.f32.xlu0 %v1374_v58 }
 0x63d   : > { %2098 = vmatpush3.bf16.msra.mxu1 %v2249_v3 }
 0x63e   : > { %2099 = vmatprep.subr.bf16.mxu1 %v2430_v2 }
 0x641   : > { %2100 = vmatpush3.bf16.msra.mxu1 %v2250_v15 }
 0x642   : > { %2101 = vmatprep.subr.bf16.mxu1 %v2430_v2 }
 0x645   : > { %2102 = vmatpush3.bf16.msra.mxu1 %v2251_v16 }
 0x646   : > { %2115 = vmatprep.subr.bf16.mxu1 (!%p1974_p4), %v2446_v47 }
 0x6c8   : > { %v1376_v59 = vpop.xlane.xlu0 %1375 }
 0x6c9   : > { %v1378_v60 = vmul.f32 0.03125, %v1376_v59 }
 0x6cb   : > { %v1379_v61 = vsub.f32 %v1371_v57, %v1378_v60  ;;  %v1656_v60 = vld [vmem:[%s3065_s21] sm:$0x3] (!%p1974_p4) }
 0x6cd   : > { %v1380_v62 = vmul.f32 %v1379_v61, %v1379_v61 }
 0x6cf   : > { %v1381_v63 = vsel %vm801_vm2, %v1380_v62, 0.0 }
 0x6d0   : > { %1382 = vadd.xlane.f32.xlu1 %v1381_v63 }
 0x75d   : > { %v1383_v5 = vpop.xlane.xlu1 %1382 }
 0x75e   : > { %v1384_v6 = vmul.f32 0.03125, %v1383_v5 }
 0x760   : > { %v1385_v7 = vadd.f32 1e-05, %v1384_v6 }
 0x762   : > { %2268 = vrsqrt.f32 %v1385_v7 }
 0x76c   : > { %v2269_v8 = vpop.eup %2268 }
 0x76d   : > { %v1387_v10 = vmul.f32 %v2269_v8, %v1379_v61 }
 0x76f   : > { %v1394_v13 = vmul.f32 %v1960_v9, %v1387_v10 }
 0x771   : > { %v1401_v11 = vadd.f32 %v1961_v12, %v1394_v13 }
 0x773   : > { %v1406_v14 = vpack.c.bf16 %v1401_v11, %v1401_v11 }
 0x775   : > { %2092 = vmatmul.mubr.msk.bf16.vlgmr.msra.gmra.mrb[20].mxu0 %vm801_vm2, %v1406_v14 }
 0x776   : > { %2108 = vmatpush3.bf16.msra.mxu0 (!%p1974_p4), %v2273_v46  ;;  %2111 = vmatprep.mubr.msk.bf16.mxu0 (!%p1974_p4), %vm2447_vm8, %v2446_v47 }
 0x777   : > { %2109 = vmatprep.subr.bf16.mxu0 (!%p1974_p4), %v2446_v47 }
 0x77a   : > { %2110 = vmatpush3.bf16.msra.mxu0 (!%p1974_p4), %v2274_v48 }
 0x848   : > { %v1463_v18 = vpop.f32.mrb[20].mxu0 }
 0x849   : > { %v1464_v19 = vadd.f32 %v1962_v17, %v1463_v18  ;;  %v2093_v20 = vpop.f32.mrb[21].mxu0 }
 0x84a   : > { %v1466_v21 = vpop.f32.mrb[22].mxu0 }
 0x84b   : > { %v1469_v22 = vmax.f32 %v1464_v19, 0.0  ;;  %v2094_v23 = vpop.f32.mrb[23].mxu0 }
 0x84d   : > { %v1478_v24 = vpack.c.bf16 %v1469_v22, %v1469_v22 }
 0x84f   : > { %2104 = vmatmul.mubr.msk.bf16.vlgmr.msra.gmra.mrb[20].mxu1 %vm1510_vm7, %v1478_v24 }
 0x850   : > { %2117 = vmatprep.mubr.msk.bf16.mxu1 (!%p1974_p4), %vm2447_vm8, %v2446_v47 }
 0x922   : > { %v1548_v26 = vpop.f32.mrb[20].mxu1 }
 0x923   : > { %v1549_v27 = vadd.f32 %v1966_v25, %v1548_v26  ;;  %v2105_v2 = vpop.f32.mrb[21].mxu1 }
 0x924   : > { %v1551_v28 = vpop.f32.mrb[22].mxu1 }
 0x925   : > { %v2106_v29 = vpop.f32.mrb[23].mxu1  ;;  %v1554_v30 = vadd.f32 %v1549_v27, %v1401_v11 }
 0x927   : > { %v1557_v31 = vsel %vm801_vm2, %v1554_v30, 0.0 }
 0x928   : > { %1558 = vadd.xlane.f32.xlu0 %v1557_v31 }
 0x9b5   : > { %v1559_v32 = vpop.xlane.xlu0 %1558 }
 0x9b6   : > { %v1560_v33 = vmul.f32 0.03125, %v1559_v32 }
 0x9b8   : > { %v1561_v34 = vsub.f32 %v1554_v30, %v1560_v33 }
 0x9ba   : > { %v1562_v35 = vmul.f32 %v1561_v34, %v1561_v34 }
 0x9bc   : > { %v1563_v36 = vsel %vm801_vm2, %v1562_v35, 0.0 }
 0x9bd   : > { %1564 = vadd.xlane.f32.xlu0 %v1563_v36 }
 0x9d3   : > { %1661 = vperm.xlu0 (!%p1974_p4), %2272, %v1658_v50  }
 0xa4a   : > { %v1565_v37 = vpop.xlane.xlu0 %1564 }
 0xa4b   : > { %v1566_v38 = vmul.f32 0.03125, %v1565_v37 }
 0xa4d   : > { %v1567_v39 = vadd.f32 1e-05, %v1566_v38 }
 0xa4f   : > { %2270 = vrsqrt.f32 %v1567_v39 }
 0xa52   : > { %v1662_v61 = vpop.permute.xlu0 (!%p1974_p4), %1661 }
 0xa59   : > { %v2271_v40 = vpop.eup %2270 }
 0xa5a   : > { %v1569_v42 = vmul.f32 %v2271_v40, %v1561_v34  ;;  %1588 = sbr.rel (%p1974_p4) target bundleno = 3093 (0xc15), region = 100 }
 0xa5c   : > { %v1576_v44 = vmul.f32 %v1972_v41, %v1569_v42 }
 0xa5e   : > { %v1583_v45 = vadd.f32 %v1973_v43, %v1576_v44 }
 0xa60   : > { %1584 = vst.msk [vmem:[#allocation2] sm:$0xff] %vm801_vm2, %v1583_v45  ;;  %v1593_v49 = vpack.c.bf16 (!%p1974_p4), %v1583_v45, %v1583_v45 }
 0xa62   : > { %2112 = vmatmul.mubr.msk.bf16.vlgmr.msra.gmra.mrb[0].mxu0 %vm801_vm2, %v1593_v49 }
 0xb35   : > { %v1650_v53 = vpop.f32.mrb[0].mxu0 }
 0xb36   : > { %v1651_v54 = vadd.f32 %v1975_v52, %v1650_v53  ;;  %v2113_v55 = vpop.f32.mrb[1].mxu0 }
 0xb37   : > { %v1653_v56 = vpop.f32.mrb[2].mxu0 }
 0xb38   : > { %v2114_v57 = vpop.f32.mrb[3].mxu0  ;;  %v1657_v58 = vpack.c.bf16 %v1651_v54, %v1651_v54 }
 0xb3a   : > { %v1668_v59 = vsel %vm917_vm4, %v1657_v58, 0 }
 0xb3b   : > { %2116 = vmatpush3.bf16.msra.mxu1 %v1668_v59 }
 0xb3e   : > { %2118 = vmatmul.mubr.msk.bf16.vlgmr.msra.gmra.mrb[0].mxu1 %vm853_vm3, %v1656_v60 }
 0xc11   : > { %v1704_v62 = vpop.f32.mrb[0].mxu1 }
 0xc12   : > { %v1705_v63 = vadd.f32 %v1704_v62, %v1662_v61  ;;  %v2119_v0 = vpop.f32.mrb[1].mxu1 }
 0xc13   : > { %v1707_v1 = vpop.f32.mrb[2].mxu1 }
 0xc14   : > { %1711 = vst.msk [vmem:[%s722_s18] sm:$0xf] %vm1710_vm9, %v1705_v63  ;;  %v2120_v4 = vpop.f32.mrb[3].mxu1 }
 0xc15 PF: > { %s3066_s17 = sld [smem:[#allocation14_spill]]  ;;  %s3067_s22 = sld [smem:[#allocation10_spill]] }
 0xc16   : > { %s3068_s12 = sld [smem:[#allocation22_spill]]  ;;  %s3069_s3 = sld [smem:[#allocation35_spill]] }
 0xc17   : > { %s1726_s29 = sshll.u32 %s722_s18, 4  ;;  %s2449_s0 = smov [#allocation6]   ;;  %s1727_s29 = int_to_ptr.vmem [resolvable:$true] %s1726_s29 }
 0xc18   : > { %s2305_s10 = scalar_lea.vmem %s1727_s29, 64  ;;  %s2309_s19 = sshll.u32 %s2449_s0, 4  ;;  %s2310_s19 = int_to_ptr.vmem [resolvable:$false] %s2309_s19 }
 0xc19   : > { %p2306_p11 = scmp.ne.s32.totalorder %s1727_s29, %s2305_s10  ;;  %s2311_s23 = scalar_lea.vmem %s2310_s19, 128 }
 0xc1a   : > { %p2312_p3 = scmp.lt.s32.totalorder %s1727_s29, %s2310_s19  ;;  %p2313_p13 = scmp.lt.s32.totalorder %s2311_s23, %s2305_s10 }
 0xc1b   : > { %s1981_s16 = sshll.u32 %s3066_s17, 6  ;;  %s3070_s27 = sand.u32 1, %s3067_s22  }
 0xc1c   : > { %s2919_s28 = scalar_lea.hbm %s3069_s3, %s1981_s16  ;;  %s1713_s30 = scalar_lea.sflag [#allocation5], %s3070_s27 }
 0xc1d   : > { %p3071_p1 = scmp.ne.s32.totalorder %s3068_s12, 0  ;;  %p2314_p0 = por %p2313_p13, %p2312_p3 }
 0xc1f   : > { %p2307_p7 = pnand %p2306_p11, %p3071_p1 }
 0xc21   : > { %p2308_p10 = pneg %p2307_p7 }
 0xc23   : > { %p2315_p5 = pnand %p2314_p0, %p2308_p10 }
 0xc25   : > { %2318 = shalt.err (!%p2315_p5)
}
 0xc26   : > { %s2319_s20 = scalar_lea.hbm %s2919_s28, 64  ;;  %s2323_s24 = scalar_lea.hbm %s3069_s3, 128 }
 0xc27   : > { %p2320_p6 = scmp.ne.s32.totalorder %s2919_s28, %s2319_s20  ;;  %p2324_p2 = scmp.lt.u32.totalorder %s2919_s28, %s3069_s3 }
 0xc28   : > { %p2325_p8 = scmp.lt.u32.totalorder %s2323_s24, %s2319_s20  ;;  %p2327_p11 = scmp.lt.u32.totalorder %s2319_s20, %s2919_s28 }
 0xc29   : > { %p2321_p9 = pnand %p2320_p6, %p3071_p1 }
 0xc2a   : > { %p2326_p4 = por %p2325_p8, %p2324_p2 }
 0xc2b   : > { %p2322_p12 = pneg %p2321_p9 }
 0xc2c   : > { %p2328_p7 = por %p2327_p11, %p2326_p4 }
 0xc2e   : > { %p2329_p10 = pnand %p2328_p7, %p2322_p12 }
 0xc30   : > { %2332 = shalt.err (!%p2329_p10)
}
 0xc31   : > { %2123 = dma.vmem_to_hbm [thread:$0]  (%p3071_p1), %s1727_s29, 64, %s2919_s28, %s1713_s30  }
 0xc32 PF: > { %s3072_s25 = sld [smem:[#allocation17_spill]]  ;;  %s3073_s21 = sld [smem:[#allocation9_spill]] }
 0xc33   : > { %s3074_s17 = sld [smem:[#allocation23_spill]] }
 0xc38   : > { %p2134_p3 = scmp.ge.s32.totalorder %s3072_s25, 2  ;;  %s1738_s22 = sand.u32 1, %s3073_s21  }
 0xc39   : > { %p3075_p13 = scmp.ne.s32.totalorder %s3074_s17, 0  ;;  %s1739_s16 = scalar_lea.sflag [#allocation5], %s1738_s22 }
 0xc3b   : > { %p2130_p0 = pnand %p2134_p3, %p3075_p13 }
 0xc3d   : > { %2382 = dma.done.wait (!%p2130_p0), %s1739_s16, 64  }
 0xc3e   : > { %2384 = vsyncadd (!%p2130_p0), %s1739_s16, 4294967232  ;;  %s33_s1 = sadd.s32 1, %s3072_s25   ;;  %s3076_s24 = sld [smem:[#allocation10_spill]] }
 0xc3f   : > { %p30_p5 = scmp.ge.s32.totalorder %s33_s1, 6   ;;  %s3077_s25 = sld [smem:[#allocation11_spill]] }
 0xc40   : > { %s3078_s26 = sld [smem:[#allocation21_spill]]  ;;  %s3079_s27 = sld [smem:[#allocation12_spill]] }
 0xc41   : > { %s3080_s28 = sld [smem:[#allocation13_spill]]  ;;  %s3081_s29 = sld [smem:[#allocation20_spill]] }
 0xc42   : > { %s3082_s0 = sld [smem:[#allocation15_spill]]  ;;  %s3083_s30 = sld [smem:[#allocation16_spill]] }
 0xc43   : > { %s3084_s18 = sld [smem:[#allocation18_spill]]  ;;  %s3085_s19 = sld [smem:[#allocation19_spill]] }
 0xc44   :  { %32 = sbr.rel (!%p30_p5) target bundleno = 21 (0x15), region = 177 }
 0xc4b   :  { %1744 = vsyncpa [#allocation4], 1 }
 0xc4c   :  { %1746 = vsyncpa [#allocation4 + $0x1], 1 }
 0xc4d   :  { %1747 = vsyncpa [#allocation5], 1 }
 0xc4e   :  { %1749 = vsyncpa [#allocation5 + $0x1], 1 }

</bundles_post_ra>
